<compile_context>
chip_gen: v5e
topology: v5e:2x2
jax: 0.10.0
libtpu: 0.0.40
codegen_flags: <defaults>
</compile_context>

<pallas_src>
import jax
import jax.numpy as jnp
from jax.experimental import pallas as pl
from jax.experimental.pallas import tpu as pltpu


# ----------------------------- Pallas kernel -------------------------------

def _decoder_mlp_kernel(x_ref, w1_ref, b1_ref, w2_ref, b2_ref,
                        w3_ref, b3_ref, o_ref):
    """Fused: tanh(x@W1+b1) -> tanh(.@W2+b2) -> .@W3+b3, all in VMEM."""
    h = jnp.dot(x_ref[...], w1_ref[...],
                preferred_element_type=jnp.float32) + b1_ref[...]
    h = jnp.tanh(h)
    h = jnp.dot(h, w2_ref[...],
                preferred_element_type=jnp.float32) + b2_ref[...]
    h = jnp.tanh(h)
    o_ref[...] = jnp.dot(h, w3_ref[...],
                         preferred_element_type=jnp.float32) + b3_ref[...]


def decoder_forward(x, params, *, block_rows=256):
    """x: (B, latent) f32 -> (B, 784) f32."""
    B, L = x.shape
    w1, b1 = params["w1t"], params["b1"]   # (L, 256), (1, 256)
    w2, b2 = params["w2t"], params["b2"]   # (256, 512), (1, 512)
    w3, b3 = params["w3t"], params["b3"]   # (512, 784), (1, 784)
    H1, H2, OUT = w1.shape[1], w2.shape[1], w3.shape[1]

    # Row tiling: single full block for small batches, "parallel" row grid for
    # large ones (keeps VMEM bounded and lets v7x use both TensorCores).
    if B <= block_rows:
        bm, Bp, xp = B, B, x
    else:
        bm = block_rows
        Bp = pl.cdiv(B, bm) * bm
        xp = jnp.pad(x, ((0, Bp - B), (0, 0))) if Bp != B else x
    grid = (Bp // bm,)

    bcast = lambda i: (0, 0)  # weights/biases: same block every grid step
    out = pl.pallas_call(
        _decoder_mlp_kernel,
        out_shape=jax.ShapeDtypeStruct((Bp, OUT), jnp.float32),
        grid=grid,
        in_specs=[
            pl.BlockSpec((bm, L), lambda i: (i, 0)),
            pl.BlockSpec((L, H1), bcast),
            pl.BlockSpec((1, H1), bcast),
            pl.BlockSpec((H1, H2), bcast),
            pl.BlockSpec((1, H2), bcast),
            pl.BlockSpec((H2, OUT), bcast),
            pl.BlockSpec((1, OUT), bcast),
        ],
        out_specs=pl.BlockSpec((bm, OUT), lambda i: (i, 0)),
        compiler_params=pltpu.CompilerParams(
            dimension_semantics=("parallel",),
            vmem_limit_bytes=64 << 20,
        ),
    )(xp, w1, b1, w2, b2, w3, b3)
    return out[:B]


# ------------------------- parameter preparation ---------------------------

def prepare_params(torch_style_params):
    """Hoist all weight transposes / bias reshapes out of the per-call path.

    torch_style_params holds PyTorch nn.Linear layouts: W_i (out, in), b_i (out,).
    """
    p = torch_style_params
    return {
        "w1t": p["w1"].T, "b1": p["b1"].reshape(1, -1),
        "w2t": p["w2"].T, "b2": p["b2"].reshape(1, -1),
        "w3t": p["w3"].T, "b3": p["b3"].reshape(1, -1),
    }


# ------------------------- pure-JAX reference ------------------------------

def decoder_reference(x, torch_style_params):
    p = torch_style_params
    h = jnp.tanh(x @ p["w1"].T + p["b1"])
    h = jnp.tanh(h @ p["w2"].T + p["b2"])
    return h @ p["w3"].T + p["b3"]


# --------------------------------- main -------------------------------------

if __name__ == "__main__":
    latent_size = 32
    dropout = 0          # module asserts dropout == 0 and never uses it
    assert dropout == 0
    B = 2

    key = jax.random.PRNGKey(0)
    kx, k1, k2, k3, k4, k5, k6 = jax.random.split(key, 7)

    def init(k, shape, fan_in):
        return jax.random.normal(k, shape, jnp.float32) / jnp.sqrt(fan_in)

    # PyTorch nn.Linear layouts: weight (out, in), bias (out,).
    torch_params = {
        "w1": init(k1, (256, latent_size), latent_size),
        "b1": init(k2, (256,), latent_size),
        "w2": init(k3, (512, 256), 256),
        "b2": init(k4, (512,), 256),
        "w3": init(k5, (784, 512), 512),
        "b3": init(k6, (784,), 512),
    }
    params = prepare_params(torch_params)   # done once, outside the hot path

    x = jax.random.normal(kx, (B, latent_size), jnp.float32)

    out = decoder_forward(x, params)
    out = jax.block_until_ready(out)

    ref = decoder_reference(x, torch_params)
    assert out.shape == (B, 784), out.shape
    assert jnp.allclose(out, ref, atol=1e-4, rtol=1e-4), (
        float(jnp.max(jnp.abs(out - ref))))

    print("KERNEL_OK")
</pallas_src>

<mosaic_0001>
module attributes {stable_mosaic.version = 11 : i64} {
  func.func @_decoder_mlp_kernel(%arg0: i32, %arg1: memref<2x32xf32, #tpu.memory_space<vmem>>, %arg2: memref<32x256xf32, #tpu.memory_space<vmem>>, %arg3: memref<1x256xf32, #tpu.memory_space<vmem>>, %arg4: memref<256x512xf32, #tpu.memory_space<vmem>>, %arg5: memref<1x512xf32, #tpu.memory_space<vmem>>, %arg6: memref<512x784xf32, #tpu.memory_space<vmem>>, %arg7: memref<1x784xf32, #tpu.memory_space<vmem>>, %arg8: memref<2x784xf32, #tpu.memory_space<vmem>>) attributes {dimension_semantics = [#tpu.dimension_semantics<parallel>], iteration_bounds = array<i64: 1>, scalar_prefetch = 0 : i64, scratch_operands = 0 : i64, tpu.core_type = #tpu.core_type<tc>, window_params = [{transform_indices = @transform_0, window_bounds = array<i64: 2, 32>}, {pipeline_mode = #tpu.pipeline_mode<synchronous>, transform_indices = @transform_1, window_bounds = array<i64: 32, 256>}, {pipeline_mode = #tpu.pipeline_mode<synchronous>, transform_indices = @transform_2, window_bounds = array<i64: 1, 256>}, {pipeline_mode = #tpu.pipeline_mode<synchronous>, transform_indices = @transform_3, window_bounds = array<i64: 256, 512>}, {pipeline_mode = #tpu.pipeline_mode<synchronous>, transform_indices = @transform_4, window_bounds = array<i64: 1, 512>}, {pipeline_mode = #tpu.pipeline_mode<synchronous>, transform_indices = @transform_5, window_bounds = array<i64: 512, 784>}, {pipeline_mode = #tpu.pipeline_mode<synchronous>, transform_indices = @transform_6, window_bounds = array<i64: 1, 784>}, {transform_indices = @transform_7, window_bounds = array<i64: 2, 784>}]} {
    %c0 = arith.constant 0 : index
    %c0_0 = arith.constant 0 : index
    %0 = vector.load %arg1[%c0, %c0_0] : memref<2x32xf32, #tpu.memory_space<vmem>>, vector<2x32xf32>
    %c0_1 = arith.constant 0 : index
    %c0_2 = arith.constant 0 : index
    %1 = vector.load %arg2[%c0_1, %c0_2] : memref<32x256xf32, #tpu.memory_space<vmem>>, vector<32x256xf32>
    %cst = arith.constant dense<0.000000e+00> : vector<2x256xf32>
    %2 = tpu.matmul %0, %1, %cst {dimension_numbers = #tpu.dot_dimension_numbers<[1], [0], [0], [1], [0, 0, 1, 1], [], []>} : vector<2x32xf32>, vector<32x256xf32>, vector<2x256xf32> -> vector<2x256xf32>
    %c0_3 = arith.constant 0 : index
    %c0_4 = arith.constant 0 : index
    %3 = vector.load %arg3[%c0_3, %c0_4] : memref<1x256xf32, #tpu.memory_space<vmem>>, vector<1x256xf32>
    %4 = vector.broadcast %3 : vector<1x256xf32> to vector<2x256xf32>
    %5 = arith.addf %2, %4 : vector<2x256xf32>
    %6 = math.tanh %5 : vector<2x256xf32>
    %c0_5 = arith.constant 0 : index
    %c0_6 = arith.constant 0 : index
    %7 = vector.load %arg4[%c0_5, %c0_6] : memref<256x512xf32, #tpu.memory_space<vmem>>, vector<256x512xf32>
    %cst_7 = arith.constant dense<0.000000e+00> : vector<2x512xf32>
    %8 = tpu.matmul %6, %7, %cst_7 {dimension_numbers = #tpu.dot_dimension_numbers<[1], [0], [0], [1], [0, 0, 1, 1], [], []>} : vector<2x256xf32>, vector<256x512xf32>, vector<2x512xf32> -> vector<2x512xf32>
    %c0_8 = arith.constant 0 : index
    %c0_9 = arith.constant 0 : index
    %9 = vector.load %arg5[%c0_8, %c0_9] : memref<1x512xf32, #tpu.memory_space<vmem>>, vector<1x512xf32>
    %10 = vector.broadcast %9 : vector<1x512xf32> to vector<2x512xf32>
    %11 = arith.addf %8, %10 : vector<2x512xf32>
    %12 = math.tanh %11 : vector<2x512xf32>
    %c0_10 = arith.constant 0 : index
    %c0_11 = arith.constant 0 : index
    %13 = vector.load %arg6[%c0_10, %c0_11] : memref<512x784xf32, #tpu.memory_space<vmem>>, vector<512x784xf32>
    %cst_12 = arith.constant dense<0.000000e+00> : vector<2x784xf32>
    %14 = tpu.matmul %12, %13, %cst_12 {dimension_numbers = #tpu.dot_dimension_numbers<[1], [0], [0], [1], [0, 0, 1, 1], [], []>} : vector<2x512xf32>, vector<512x784xf32>, vector<2x784xf32> -> vector<2x784xf32>
    %c0_13 = arith.constant 0 : index
    %c0_14 = arith.constant 0 : index
    %15 = vector.load %arg7[%c0_13, %c0_14] : memref<1x784xf32, #tpu.memory_space<vmem>>, vector<1x784xf32>
    %16 = vector.broadcast %15 : vector<1x784xf32> to vector<2x784xf32>
    %17 = arith.addf %14, %16 : vector<2x784xf32>
    %c0_15 = arith.constant 0 : index
    %c0_16 = arith.constant 0 : index
    %18 = vector.load %arg8[%c0_15, %c0_16] : memref<2x784xf32, #tpu.memory_space<vmem>>, vector<2x784xf32>
    tpu.vector_store %arg8[%c0_15, %c0_16], %17 {strides = array<i32>} : memref<2x784xf32, #tpu.memory_space<vmem>>, vector<2x784xf32>,
    return
  }
  func.func @transform_0(%arg0: i32) -> (i32, i32) {
    %c0_i32 = arith.constant 0 : i32
    %c0_i32_0 = arith.constant 0 : i32
    return %arg0, %c0_i32 : i32, i32
  }
  func.func @transform_1(%arg0: i32) -> (i32, i32) {
    %c0_i32 = arith.constant 0 : i32
    %c0_i32_0 = arith.constant 0 : i32
    %c0_i32_1 = arith.constant 0 : i32
    return %c0_i32, %c0_i32_0 : i32, i32
  }
  func.func @transform_2(%arg0: i32) -> (i32, i32) {
    %c0_i32 = arith.constant 0 : i32
    %c0_i32_0 = arith.constant 0 : i32
    %c0_i32_1 = arith.constant 0 : i32
    return %c0_i32, %c0_i32_0 : i32, i32
  }
  func.func @transform_3(%arg0: i32) -> (i32, i32) {
    %c0_i32 = arith.constant 0 : i32
    %c0_i32_0 = arith.constant 0 : i32
    %c0_i32_1 = arith.constant 0 : i32
    return %c0_i32, %c0_i32_0 : i32, i32
  }
  func.func @transform_4(%arg0: i32) -> (i32, i32) {
    %c0_i32 = arith.constant 0 : i32
    %c0_i32_0 = arith.constant 0 : i32
    %c0_i32_1 = arith.constant 0 : i32
    return %c0_i32, %c0_i32_0 : i32, i32
  }
  func.func @transform_5(%arg0: i32) -> (i32, i32) {
    %c0_i32 = arith.constant 0 : i32
    %c0_i32_0 = arith.constant 0 : i32
    %c0_i32_1 = arith.constant 0 : i32
    return %c0_i32, %c0_i32_0 : i32, i32
  }
  func.func @transform_6(%arg0: i32) -> (i32, i32) {
    %c0_i32 = arith.constant 0 : i32
    %c0_i32_0 = arith.constant 0 : i32
    %c0_i32_1 = arith.constant 0 : i32
    return %c0_i32, %c0_i32_0 : i32, i32
  }
  func.func @transform_7(%arg0: i32) -> (i32, i32) {
    %c0_i32 = arith.constant 0 : i32
    %c0_i32_0 = arith.constant 0 : i32
    return %arg0, %c0_i32 : i32, i32
  }
}

</mosaic_0001>

<bundles_post_ra>
// kernel: tpu_custom_call.1
= control target key start
LH: loop header
LB: loop body
LE: loop exit
PB: predicated region body
PF: predicated region fallthrough
CT: control target
= control target key end

     0   :  { %vm42_vm0 = vcmask 261120   ;;  %s3348_s0 = inlined_call_operand.vmem [shape: f32[2,32], index: 0, kind: input, shape index: {}]   ;;  %s3349_s1 = inlined_call_operand.vmem [shape: f32[32,256], index: 1, kind: input, shape index: {}]   ;;  %s3350_s2 = inlined_call_operand.vmem [shape: f32[1,256], index: 2, kind: input, shape index: {}]   ;;  %s3351_s3 = inlined_call_operand.vmem [shape: f32[256,512], index: 3, kind: input, shape index: {}]   ;;  %s3352_s4 = inlined_call_operand.vmem [shape: f32[1,512], index: 4, kind: input, shape index: {}]   ;;  %s3353_s5 = inlined_call_operand.vmem [shape: f32[512,784], index: 5, kind: input, shape index: {}]   ;;  %s3354_s6 = inlined_call_operand.vmem [shape: f32[1,784], index: 6, kind: input, shape index: {}]   ;;  %s3355_s7 = inlined_call_operand.hbm [shape: f32[2,784], index: 7, kind: output, shape index: {}]  }
   0x1   :  { %v34_v0 = vld [vmem:[%s3349_s1 + $0x30] sm:$0xff]  ;;  %v35_v1 = vld [vmem:[%s3349_s1 + $0x38] sm:$0xff]  ;;  %v32_v2 = vld [vmem:[%s3349_s1 + $0x20] sm:$0xff] }
   0x2   :  { %58 = vmatpush.msra.mxu0 %v34_v0  ;;  %78 = vmatpush.msra.mxu1 %v35_v1  ;;  %v33_v3 = vld [vmem:[%s3349_s1 + $0x28] sm:$0xff]  ;;  %v30_v4 = vld [vmem:[%s3349_s1 + $0x10] sm:$0xff]  ;;  %v31_v5 = vld [vmem:[%s3349_s1 + $0x18] sm:$0xff] }
   0x3   :  { %v28_v6 = vld [vmem:[%s3349_s1] sm:$0xff]  ;;  %v29_v9 = vld [vmem:[%s3349_s1 + $0x8] sm:$0xff] }
   0x4   :  { %59 = vmatpush.msra.mxu0 %v32_v2  ;;  %79 = vmatpush.msra.mxu1 %v33_v3  ;;  %v148_v7 = vld [vmem:[%s3351_s3 + $0x1e0] sm:$0xff]  ;;  %v149_v13 = vld [vmem:[%s3351_s3 + $0x1e8] sm:$0xff] }
   0x5   :  { %v212_v8 = vld [vmem:[%s3351_s3 + $0x3e0] sm:$0xff]  ;;  %226 = vmatpush.msra.mxu2 %v148_v7  ;;  %v213_v14 = vld [vmem:[%s3351_s3 + $0x3e8] sm:$0xff] }
   0x6   :  { %246 = vmatpush.msra.mxu3 %v212_v8  ;;  %v144_v10 = vld [vmem:[%s3351_s3 + $0x1c0] sm:$0xff]  ;;  %60 = vmatpush.msra.mxu0 %v30_v4  ;;  %v145_v17 = vld [vmem:[%s3351_s3 + $0x1c8] sm:$0xff] }
   0x7   :  { %v208_v11 = vld [vmem:[%s3351_s3 + $0x3c0] sm:$0xff]  ;;  %80 = vmatpush.msra.mxu1 %v31_v5  ;;  %227 = vmatpush.msra.mxu2 %v144_v10  ;;  %v209_v18 = vld [vmem:[%s3351_s3 + $0x3c8] sm:$0xff] }
   0x8   :  { %v27_v12 = vld [vmem:[%s3348_s0] sm:$0x3]  ;;  %247 = vmatpush.msra.mxu3 %v208_v11  ;;  %61 = vmatpush.msra.mxu0 %v28_v6  ;;  %v141_v21 = vld [vmem:[%s3351_s3 + $0x1a8] sm:$0xff] }
   0x9   :  { %81 = vmatpush.msra.mxu1 %v29_v9  ;;  %v140_v15 = vld [vmem:[%s3351_s3 + $0x1a0] sm:$0xff]  ;;  %1458 = vmatmul.msk.f32.vlgmr.msra.gmra.mxu0 %vm42_vm0, %v27_v12  ;;  %v205_v22 = vld [vmem:[%s3351_s3 + $0x3a8] sm:$0xff] }
   0xa   :  { %v204_v16 = vld [vmem:[%s3351_s3 + $0x3a0] sm:$0xff]  ;;  %1459 = vmatmul.msk.f32.vlgmr.msra.gmra.mxu1 %vm42_vm0, %v27_v12  ;;  %266 = vmatpush.msrb.mxu0 %v149_v13  ;;  %v137_v25 = vld [vmem:[%s3351_s3 + $0x188] sm:$0xff] }
   0xb   :  { %286 = vmatpush.msrb.mxu1 %v213_v14  ;;  %v136_v19 = vld [vmem:[%s3351_s3 + $0x180] sm:$0xff]  ;;  %228 = vmatpush.msra.mxu2 %v140_v15  ;;  %v201_v26 = vld [vmem:[%s3351_s3 + $0x388] sm:$0xff] }
   0xc   :  { %v200_v20 = vld [vmem:[%s3351_s3 + $0x380] sm:$0xff]  ;;  %248 = vmatpush.msra.mxu3 %v204_v16  ;;  %267 = vmatpush.msrb.mxu0 %v145_v17  ;;  %v133_v29 = vld [vmem:[%s3351_s3 + $0x168] sm:$0xff] }
   0xd   :  { %287 = vmatpush.msrb.mxu1 %v209_v18  ;;  %v132_v23 = vld [vmem:[%s3351_s3 + $0x160] sm:$0xff]  ;;  %229 = vmatpush.msra.mxu2 %v136_v19  ;;  %v197_v30 = vld [vmem:[%s3351_s3 + $0x368] sm:$0xff] }
   0xe   :  { %v196_v24 = vld [vmem:[%s3351_s3 + $0x360] sm:$0xff]  ;;  %249 = vmatpush.msra.mxu3 %v200_v20  ;;  %268 = vmatpush.msrb.mxu0 %v141_v21  ;;  %v129_v33 = vld [vmem:[%s3351_s3 + $0x148] sm:$0xff] }
   0xf   :  { %288 = vmatpush.msrb.mxu1 %v205_v22  ;;  %v128_v27 = vld [vmem:[%s3351_s3 + $0x140] sm:$0xff]  ;;  %230 = vmatpush.msra.mxu2 %v132_v23  ;;  %v193_v34 = vld [vmem:[%s3351_s3 + $0x348] sm:$0xff] }
  0x10   :  { %v192_v28 = vld [vmem:[%s3351_s3 + $0x340] sm:$0xff]  ;;  %250 = vmatpush.msra.mxu3 %v196_v24  ;;  %269 = vmatpush.msrb.mxu0 %v137_v25  ;;  %v125_v37 = vld [vmem:[%s3351_s3 + $0x128] sm:$0xff] }
  0x11   :  { %289 = vmatpush.msrb.mxu1 %v201_v26  ;;  %v124_v31 = vld [vmem:[%s3351_s3 + $0x120] sm:$0xff]  ;;  %231 = vmatpush.msra.mxu2 %v128_v27  ;;  %v189_v38 = vld [vmem:[%s3351_s3 + $0x328] sm:$0xff] }
  0x12   :  { %v188_v32 = vld [vmem:[%s3351_s3 + $0x320] sm:$0xff]  ;;  %251 = vmatpush.msra.mxu3 %v192_v28  ;;  %270 = vmatpush.msrb.mxu0 %v133_v29  ;;  %v121_v41 = vld [vmem:[%s3351_s3 + $0x108] sm:$0xff] }
  0x13   :  { %290 = vmatpush.msrb.mxu1 %v197_v30  ;;  %v120_v35 = vld [vmem:[%s3351_s3 + $0x100] sm:$0xff]  ;;  %232 = vmatpush.msra.mxu2 %v124_v31  ;;  %v185_v42 = vld [vmem:[%s3351_s3 + $0x308] sm:$0xff] }
  0x14   :  { %v184_v36 = vld [vmem:[%s3351_s3 + $0x300] sm:$0xff]  ;;  %252 = vmatpush.msra.mxu3 %v188_v32  ;;  %271 = vmatpush.msrb.mxu0 %v129_v33  ;;  %v117_v45 = vld [vmem:[%s3351_s3 + $0xe8] sm:$0xff] }
  0x15   :  { %291 = vmatpush.msrb.mxu1 %v193_v34  ;;  %v116_v39 = vld [vmem:[%s3351_s3 + $0xe0] sm:$0xff]  ;;  %233 = vmatpush.msra.mxu2 %v120_v35  ;;  %v181_v46 = vld [vmem:[%s3351_s3 + $0x2e8] sm:$0xff] }
  0x16   :  { %v180_v40 = vld [vmem:[%s3351_s3 + $0x2e0] sm:$0xff]  ;;  %253 = vmatpush.msra.mxu3 %v184_v36  ;;  %272 = vmatpush.msrb.mxu0 %v125_v37  ;;  %v113_v49 = vld [vmem:[%s3351_s3 + $0xc8] sm:$0xff] }
  0x17   :  { %292 = vmatpush.msrb.mxu1 %v189_v38  ;;  %v112_v43 = vld [vmem:[%s3351_s3 + $0xc0] sm:$0xff]  ;;  %234 = vmatpush.msra.mxu2 %v116_v39  ;;  %v177_v50 = vld [vmem:[%s3351_s3 + $0x2c8] sm:$0xff] }
  0x18   :  { %v176_v44 = vld [vmem:[%s3351_s3 + $0x2c0] sm:$0xff]  ;;  %254 = vmatpush.msra.mxu3 %v180_v40  ;;  %273 = vmatpush.msrb.mxu0 %v121_v41  ;;  %v109_v53 = vld [vmem:[%s3351_s3 + $0xa8] sm:$0xff] }
  0x19   :  { %293 = vmatpush.msrb.mxu1 %v185_v42  ;;  %v108_v47 = vld [vmem:[%s3351_s3 + $0xa0] sm:$0xff]  ;;  %235 = vmatpush.msra.mxu2 %v112_v43  ;;  %v173_v54 = vld [vmem:[%s3351_s3 + $0x2a8] sm:$0xff] }
  0x1a   :  { %v172_v48 = vld [vmem:[%s3351_s3 + $0x2a0] sm:$0xff]  ;;  %255 = vmatpush.msra.mxu3 %v176_v44  ;;  %274 = vmatpush.msrb.mxu0 %v117_v45  ;;  %v105_v57 = vld [vmem:[%s3351_s3 + $0x88] sm:$0xff] }
  0x1b   :  { %294 = vmatpush.msrb.mxu1 %v181_v46  ;;  %v104_v51 = vld [vmem:[%s3351_s3 + $0x80] sm:$0xff]  ;;  %236 = vmatpush.msra.mxu2 %v108_v47  ;;  %v169_v58 = vld [vmem:[%s3351_s3 + $0x288] sm:$0xff] }
  0x1c   :  { %v168_v52 = vld [vmem:[%s3351_s3 + $0x280] sm:$0xff]  ;;  %256 = vmatpush.msra.mxu3 %v172_v48  ;;  %275 = vmatpush.msrb.mxu0 %v113_v49  ;;  %v101_v61 = vld [vmem:[%s3351_s3 + $0x68] sm:$0xff] }
  0x1d   :  { %295 = vmatpush.msrb.mxu1 %v177_v50  ;;  %v100_v55 = vld [vmem:[%s3351_s3 + $0x60] sm:$0xff]  ;;  %237 = vmatpush.msra.mxu2 %v104_v51  ;;  %v165_v62 = vld [vmem:[%s3351_s3 + $0x268] sm:$0xff] }
  0x1e   :  { %v164_v56 = vld [vmem:[%s3351_s3 + $0x260] sm:$0xff]  ;;  %257 = vmatpush.msra.mxu3 %v168_v52  ;;  %276 = vmatpush.msrb.mxu0 %v109_v53  ;;  %v97_v1 = vld [vmem:[%s3351_s3 + $0x48] sm:$0xff] }
  0x1f   :  { %296 = vmatpush.msrb.mxu1 %v173_v54  ;;  %v96_v59 = vld [vmem:[%s3351_s3 + $0x40] sm:$0xff]  ;;  %238 = vmatpush.msra.mxu2 %v100_v55  ;;  %v161_v2 = vld [vmem:[%s3351_s3 + $0x248] sm:$0xff] }
  0x20   :  { %v160_v60 = vld [vmem:[%s3351_s3 + $0x240] sm:$0xff]  ;;  %258 = vmatpush.msra.mxu3 %v164_v56  ;;  %277 = vmatpush.msrb.mxu0 %v105_v57  ;;  %v93_v5 = vld [vmem:[%s3351_s3 + $0x28] sm:$0xff] }
  0x21   :  { %297 = vmatpush.msrb.mxu1 %v169_v58  ;;  %v92_v63 = vld [vmem:[%s3351_s3 + $0x20] sm:$0xff]  ;;  %239 = vmatpush.msra.mxu2 %v96_v59  ;;  %v157_v6 = vld [vmem:[%s3351_s3 + $0x228] sm:$0xff] }
  0x22   :  { %v156_v0 = vld [vmem:[%s3351_s3 + $0x220] sm:$0xff]  ;;  %259 = vmatpush.msra.mxu3 %v160_v60  ;;  %278 = vmatpush.msrb.mxu0 %v101_v61 }
  0x23   :  { %298 = vmatpush.msrb.mxu1 %v165_v62  ;;  %v88_v3 = vld [vmem:[%s3351_s3] sm:$0xff]  ;;  %240 = vmatpush.msra.mxu2 %v92_v63 }
  0x24   :  { %v152_v4 = vld [vmem:[%s3351_s3 + $0x200] sm:$0xff]  ;;  %260 = vmatpush.msra.mxu3 %v156_v0 }
  0x25   :  { %12 = vsyncpa [#allocation3], 0  ;;  %279 = vmatpush.msrb.mxu0 %v97_v1  ;;  %299 = vmatpush.msrb.mxu1 %v161_v2  ;;  %v150_v7 = vld [vmem:[%s3351_s3 + $0x1f0] sm:$0xff]  ;;  %v89_v9 = vld [vmem:[%s3351_s3 + $0x8] sm:$0xff]  ;;  %vm1426_vm1 = vcmask 1041408   ;;  %vm1428_vm2 = vcmask 1045508  }
  0x26   :  { %v214_v8 = vld [vmem:[%s3351_s3 + $0x3f0] sm:$0xff]  ;;  %241 = vmatpush.msra.mxu2 %v88_v3  ;;  %261 = vmatpush.msra.mxu3 %v152_v4  ;;  %v153_v10 = vld [vmem:[%s3351_s3 + $0x208] sm:$0xff]  ;;  %v151_v11 = vld [vmem:[%s3351_s3 + $0x1f8] sm:$0xff]  ;;  %vm1430_vm3 = vcmask 1043456   ;;  %vm1437_vm4 = vcmask 1043458   ;;  %vm1439_vm6 = vcmask 128004  }
  0x27   :  { %280 = vmatpush.msrb.mxu0 %v93_v5  ;;  %300 = vmatpush.msrb.mxu1 %v157_v6  ;;  %v215_v12 = vld [vmem:[%s3351_s3 + $0x3f8] sm:$0xff]  ;;  %v146_v13 = vld [vmem:[%s3351_s3 + $0x1d0] sm:$0xff]  ;;  %vm1438_vm5 = vmor %vm1437_vm4, %vm1426_vm1 }
  0x28   :  { %306 = vmatpush.msrb.mxu2 %v150_v7  ;;  %326 = vmatpush.msrb.mxu3 %v214_v8  ;;  %v210_v14 = vld [vmem:[%s3351_s3 + $0x3d0] sm:$0xff]  ;;  %v147_v15 = vld [vmem:[%s3351_s3 + $0x1d8] sm:$0xff]  ;;  %vm1440_vm7 = vmor %vm1439_vm6, %vm1438_vm5 }
  0x29   :  { %281 = vmatpush.msrb.mxu0 %v89_v9  ;;  %301 = vmatpush.msrb.mxu1 %v153_v10  ;;  %v211_v16 = vld [vmem:[%s3351_s3 + $0x3d8] sm:$0xff]  ;;  %v142_v17 = vld [vmem:[%s3351_s3 + $0x1b0] sm:$0xff]  ;;  %v36_v9 = vld [vmem:[%s3350_s2] sm:$0x3] }
  0x2a   :  { %v206_v18 = vld [vmem:[%s3351_s3 + $0x3b0] sm:$0xff]  ;;  %307 = vmatpush.msrb.mxu2 %v146_v13  ;;  %327 = vmatpush.msrb.mxu3 %v210_v14  ;;  %v143_v19 = vld [vmem:[%s3351_s3 + $0x1b8] sm:$0xff]  ;;  %v38_v10 = vperm.slane %v36_v9, 0 }
  0x2b   :  { %346 = vmatpush.msra.mxu0 %v151_v11  ;;  %366 = vmatpush.msra.mxu1 %v215_v12  ;;  %v207_v20 = vld [vmem:[%s3351_s3 + $0x3b8] sm:$0xff]  ;;  %v138_v21 = vld [vmem:[%s3351_s3 + $0x190] sm:$0xff]  ;;  %v39_v11 = vperm.slane %v36_v9, 1 }
  0x2c   :  { %v202_v22 = vld [vmem:[%s3351_s3 + $0x390] sm:$0xff]  ;;  %308 = vmatpush.msrb.mxu2 %v142_v17  ;;  %328 = vmatpush.msrb.mxu3 %v206_v18  ;;  %v139_v23 = vld [vmem:[%s3351_s3 + $0x198] sm:$0xff]  ;;  %v607_v17 = vld [vmem:[%s3353_s5 + $0x6c8] sm:$0xff] }
  0x2d   :  { %347 = vmatpush.msra.mxu0 %v147_v15  ;;  %367 = vmatpush.msra.mxu1 %v211_v16  ;;  %v203_v24 = vld [vmem:[%s3351_s3 + $0x398] sm:$0xff]  ;;  %v134_v25 = vld [vmem:[%s3351_s3 + $0x170] sm:$0xff]  ;;  %v495_v18 = vld [vmem:[%s3353_s5 + $0x348] sm:$0xff] }
  0x2e   :  { %v198_v26 = vld [vmem:[%s3351_s3 + $0x370] sm:$0xff]  ;;  %309 = vmatpush.msrb.mxu2 %v138_v21  ;;  %329 = vmatpush.msrb.mxu3 %v202_v22  ;;  %v135_v27 = vld [vmem:[%s3351_s3 + $0x178] sm:$0xff]  ;;  %v719_v21 = vld [vmem:[%s3353_s5 + $0xa48] sm:$0xff] }
  0x2f   :  { %348 = vmatpush.msra.mxu0 %v143_v19  ;;  %368 = vmatpush.msra.mxu1 %v207_v20  ;;  %v199_v28 = vld [vmem:[%s3351_s3 + $0x378] sm:$0xff]  ;;  %v130_v29 = vld [vmem:[%s3351_s3 + $0x150] sm:$0xff]  ;;  %v831_v20 = vld [vmem:[%s3353_s5 + $0xdc8] sm:$0xff] }
  0x30   :  { %v194_v30 = vld [vmem:[%s3351_s3 + $0x350] sm:$0xff]  ;;  %310 = vmatpush.msrb.mxu2 %v134_v25  ;;  %330 = vmatpush.msrb.mxu3 %v198_v26  ;;  %v131_v31 = vld [vmem:[%s3351_s3 + $0x158] sm:$0xff] }
  0x31   :  { %349 = vmatpush.msra.mxu0 %v139_v23  ;;  %369 = vmatpush.msra.mxu1 %v203_v24  ;;  %v195_v32 = vld [vmem:[%s3351_s3 + $0x358] sm:$0xff]  ;;  %v126_v33 = vld [vmem:[%s3351_s3 + $0x130] sm:$0xff] }
  0x32   :  { %v190_v34 = vld [vmem:[%s3351_s3 + $0x330] sm:$0xff]  ;;  %311 = vmatpush.msrb.mxu2 %v130_v29  ;;  %331 = vmatpush.msrb.mxu3 %v194_v30  ;;  %v127_v35 = vld [vmem:[%s3351_s3 + $0x138] sm:$0xff]  ;;  %v586_v30 = vld [vmem:[%s3353_s5 + $0x620] sm:$0xff] }
  0x33   :  { %350 = vmatpush.msra.mxu0 %v135_v27  ;;  %370 = vmatpush.msra.mxu1 %v199_v28  ;;  %v191_v36 = vld [vmem:[%s3351_s3 + $0x338] sm:$0xff]  ;;  %v122_v37 = vld [vmem:[%s3351_s3 + $0x110] sm:$0xff] }
  0x34   :  { %312 = vmatpush.msrb.mxu2 %v126_v33  ;;  %332 = vmatpush.msrb.mxu3 %v190_v34  ;;  %v186_v38 = vld [vmem:[%s3351_s3 + $0x310] sm:$0xff]  ;;  %v123_v39 = vld [vmem:[%s3351_s3 + $0x118] sm:$0xff]  ;;  %v698_v33 = vld [vmem:[%s3353_s5 + $0x9a0] sm:$0xff] }
  0x35   :  { %351 = vmatpush.msra.mxu0 %v131_v31  ;;  %371 = vmatpush.msra.mxu1 %v195_v32  ;;  %v187_v40 = vld [vmem:[%s3351_s3 + $0x318] sm:$0xff]  ;;  %v118_v41 = vld [vmem:[%s3351_s3 + $0xf0] sm:$0xff]  ;;  %v474_v31 = vld [vmem:[%s3353_s5 + $0x2a0] sm:$0xff] }
  0x36   :  { %313 = vmatpush.msrb.mxu2 %v122_v37  ;;  %333 = vmatpush.msrb.mxu3 %v186_v38  ;;  %v182_v42 = vld [vmem:[%s3351_s3 + $0x2f0] sm:$0xff]  ;;  %v119_v43 = vld [vmem:[%s3351_s3 + $0xf8] sm:$0xff]  ;;  %v810_v32 = vld [vmem:[%s3353_s5 + $0xd20] sm:$0xff] }
  0x37   :  { %352 = vmatpush.msra.mxu0 %v127_v35  ;;  %372 = vmatpush.msra.mxu1 %v191_v36  ;;  %v183_v44 = vld [vmem:[%s3351_s3 + $0x2f8] sm:$0xff]  ;;  %v114_v45 = vld [vmem:[%s3351_s3 + $0xd0] sm:$0xff]  ;;  %v579_v34 = vld [vmem:[%s3353_s5 + $0x5e8] sm:$0xff] }
  0x38   :  { %314 = vmatpush.msrb.mxu2 %v118_v41  ;;  %334 = vmatpush.msrb.mxu3 %v182_v42  ;;  %v178_v46 = vld [vmem:[%s3351_s3 + $0x2d0] sm:$0xff]  ;;  %v115_v47 = vld [vmem:[%s3351_s3 + $0xd8] sm:$0xff]  ;;  %v467_v35 = vld [vmem:[%s3353_s5 + $0x268] sm:$0xff] }
  0x39   :  { %353 = vmatpush.msra.mxu0 %v123_v39  ;;  %373 = vmatpush.msra.mxu1 %v187_v40  ;;  %v179_v48 = vld [vmem:[%s3351_s3 + $0x2d8] sm:$0xff]  ;;  %v110_v49 = vld [vmem:[%s3351_s3 + $0xb0] sm:$0xff]  ;;  %v803_v36 = vld [vmem:[%s3353_s5 + $0xce8] sm:$0xff] }
  0x3a   :  { %315 = vmatpush.msrb.mxu2 %v114_v45  ;;  %335 = vmatpush.msrb.mxu3 %v178_v46  ;;  %v174_v50 = vld [vmem:[%s3351_s3 + $0x2b0] sm:$0xff]  ;;  %v111_v51 = vld [vmem:[%s3351_s3 + $0xb8] sm:$0xff]  ;;  %v691_v37 = vld [vmem:[%s3353_s5 + $0x968] sm:$0xff] }
  0x3b   :  { %354 = vmatpush.msra.mxu0 %v119_v43  ;;  %374 = vmatpush.msra.mxu1 %v183_v44  ;;  %v175_v52 = vld [vmem:[%s3351_s3 + $0x2b8] sm:$0xff]  ;;  %v106_v53 = vld [vmem:[%s3351_s3 + $0x90] sm:$0xff]  ;;  %v558_v46 = vld [vmem:[%s3353_s5 + $0x540] sm:$0xff] }
  0x3c   :  { %v170_v54 = vld [vmem:[%s3351_s3 + $0x290] sm:$0xff]  ;;  %316 = vmatpush.msrb.mxu2 %v110_v49  ;;  %336 = vmatpush.msrb.mxu3 %v174_v50  ;;  %v107_v55 = vld [vmem:[%s3351_s3 + $0x98] sm:$0xff]  ;;  %v670_v49 = vld [vmem:[%s3353_s5 + $0x8c0] sm:$0xff] }
  0x3d   :  { %355 = vmatpush.msra.mxu0 %v115_v47  ;;  %375 = vmatpush.msra.mxu1 %v179_v48  ;;  %v171_v56 = vld [vmem:[%s3351_s3 + $0x298] sm:$0xff]  ;;  %v102_v57 = vld [vmem:[%s3351_s3 + $0x70] sm:$0xff]  ;;  %v446_v47 = vld [vmem:[%s3353_s5 + $0x1c0] sm:$0xff] }
  0x3e   :  { %317 = vmatpush.msrb.mxu2 %v106_v53  ;;  %337 = vmatpush.msrb.mxu3 %v170_v54  ;;  %v166_v58 = vld [vmem:[%s3351_s3 + $0x270] sm:$0xff]  ;;  %v103_v59 = vld [vmem:[%s3351_s3 + $0x78] sm:$0xff]  ;;  %v782_v48 = vld [vmem:[%s3353_s5 + $0xc40] sm:$0xff] }
  0x3f   :  { %356 = vmatpush.msra.mxu0 %v111_v51  ;;  %376 = vmatpush.msra.mxu1 %v175_v52  ;;  %v167_v60 = vld [vmem:[%s3351_s3 + $0x278] sm:$0xff]  ;;  %v98_v61 = vld [vmem:[%s3351_s3 + $0x50] sm:$0xff]  ;;  %v551_v50 = vld [vmem:[%s3353_s5 + $0x508] sm:$0xff] }
  0x40   :  { %318 = vmatpush.msrb.mxu2 %v102_v57  ;;  %338 = vmatpush.msrb.mxu3 %v166_v58  ;;  %v162_v62 = vld [vmem:[%s3351_s3 + $0x250] sm:$0xff]  ;;  %v99_v63 = vld [vmem:[%s3351_s3 + $0x58] sm:$0xff]  ;;  %v439_v51 = vld [vmem:[%s3353_s5 + $0x188] sm:$0xff] }
  0x41   :  { %357 = vmatpush.msra.mxu0 %v107_v55  ;;  %377 = vmatpush.msra.mxu1 %v171_v56  ;;  %v163_v0 = vld [vmem:[%s3351_s3 + $0x258] sm:$0xff]  ;;  %v94_v1 = vld [vmem:[%s3351_s3 + $0x30] sm:$0xff]  ;;  %v775_v52 = vld [vmem:[%s3353_s5 + $0xc08] sm:$0xff] }
  0x42   :  { %319 = vmatpush.msrb.mxu2 %v98_v61  ;;  %339 = vmatpush.msrb.mxu3 %v162_v62  ;;  %v158_v2 = vld [vmem:[%s3351_s3 + $0x230] sm:$0xff]  ;;  %v95_v3 = vld [vmem:[%s3351_s3 + $0x38] sm:$0xff]  ;;  %v663_v53 = vld [vmem:[%s3353_s5 + $0x888] sm:$0xff] }
  0x43   :  { %358 = vmatpush.msra.mxu0 %v103_v59  ;;  %378 = vmatpush.msra.mxu1 %v167_v60  ;;  %v159_v4 = vld [vmem:[%s3351_s3 + $0x238] sm:$0xff]  ;;  %v90_v5 = vld [vmem:[%s3351_s3 + $0x10] sm:$0xff]  ;;  %v530_v62 = vld [vmem:[%s3353_s5 + $0x460] sm:$0xff] }
  0x44   :  { %v154_v6 = vld [vmem:[%s3351_s3 + $0x210] sm:$0xff]  ;;  %320 = vmatpush.msrb.mxu2 %v94_v1  ;;  %340 = vmatpush.msrb.mxu3 %v158_v2  ;;  %v91_v7 = vld [vmem:[%s3351_s3 + $0x18] sm:$0xff]  ;;  %v642_v1 = vld [vmem:[%s3353_s5 + $0x7e0] sm:$0xff] }
  0x45   :  { %359 = vmatpush.msra.mxu0 %v99_v63  ;;  %379 = vmatpush.msra.mxu1 %v163_v0  ;;  %v155_v8 = vld [vmem:[%s3351_s3 + $0x218] sm:$0xff]  ;;  %v600_v22 = vld [vmem:[%s3353_s5 + $0x690] sm:$0xff]  ;;  %v418_v63 = vld [vmem:[%s3353_s5 + $0xe0] sm:$0xff] }
  0x46   :  { %321 = vmatpush.msrb.mxu2 %v90_v5  ;;  %341 = vmatpush.msrb.mxu3 %v154_v6  ;;  %v488_v23 = vld [vmem:[%s3353_s5 + $0x310] sm:$0xff]  ;;  %v593_v26 = vld [vmem:[%s3353_s5 + $0x658] sm:$0xff]  ;;  %v754_v0 = vld [vmem:[%s3353_s5 + $0xb60] sm:$0xff] }
  0x47   :  { %360 = vmatpush.msra.mxu0 %v95_v3  ;;  %380 = vmatpush.msra.mxu1 %v159_v4  ;;  %v824_v24 = vld [vmem:[%s3353_s5 + $0xd90] sm:$0xff]  ;;  %v481_v27 = vld [vmem:[%s3353_s5 + $0x2d8] sm:$0xff]  ;;  %v523_v2 = vld [vmem:[%s3353_s5 + $0x428] sm:$0xff] }
  0x48   :  { %v712_v25 = vld [vmem:[%s3353_s5 + $0xa10] sm:$0xff]  ;;  %v817_v28 = vld [vmem:[%s3353_s5 + $0xd58] sm:$0xff]  ;;  %v411_v3 = vld [vmem:[%s3353_s5 + $0xa8] sm:$0xff] }
  0x49   :  { %361 = vmatpush.msra.mxu0 %v91_v7  ;;  %381 = vmatpush.msra.mxu1 %v155_v8  ;;  %v705_v29 = vld [vmem:[%s3353_s5 + $0x9d8] sm:$0xff]  ;;  %v572_v38 = vld [vmem:[%s3353_s5 + $0x5b0] sm:$0xff]  ;;  %v747_v4 = vld [vmem:[%s3353_s5 + $0xb28] sm:$0xff] }
  0x4a   :  { %v460_v39 = vld [vmem:[%s3353_s5 + $0x230] sm:$0xff]  ;;  %v565_v42 = vld [vmem:[%s3353_s5 + $0x578] sm:$0xff]  ;;  %v635_v5 = vld [vmem:[%s3353_s5 + $0x7a8] sm:$0xff] }
  0x4b   :  { %v796_v40 = vld [vmem:[%s3353_s5 + $0xcb0] sm:$0xff]  ;;  %v453_v43 = vld [vmem:[%s3353_s5 + $0x1f8] sm:$0xff] }
  0x4c   :  { %v684_v41 = vld [vmem:[%s3353_s5 + $0x930] sm:$0xff]  ;;  %v789_v44 = vld [vmem:[%s3353_s5 + $0xc78] sm:$0xff] }
  0x4d   :  { %v677_v45 = vld [vmem:[%s3353_s5 + $0x8f8] sm:$0xff]  ;;  %v544_v54 = vld [vmem:[%s3353_s5 + $0x4d0] sm:$0xff] }
  0x4e   :  { %v432_v55 = vld [vmem:[%s3353_s5 + $0x150] sm:$0xff]  ;;  %v537_v58 = vld [vmem:[%s3353_s5 + $0x498] sm:$0xff] }
  0x4f   :  { %v768_v56 = vld [vmem:[%s3353_s5 + $0xbd0] sm:$0xff]  ;;  %v425_v59 = vld [vmem:[%s3353_s5 + $0x118] sm:$0xff] }
  0x50   :  { %v656_v57 = vld [vmem:[%s3353_s5 + $0x850] sm:$0xff]  ;;  %v761_v60 = vld [vmem:[%s3353_s5 + $0xb98] sm:$0xff] }
  0x51   :  { %v649_v61 = vld [vmem:[%s3353_s5 + $0x818] sm:$0xff]  ;;  %v516_v6 = vld [vmem:[%s3353_s5 + $0x3f0] sm:$0xff] }
  0x52   :  { %v404_v7 = vld [vmem:[%s3353_s5 + $0x70] sm:$0xff] }
  0x53   :  { %v740_v8 = vld [vmem:[%s3353_s5 + $0xaf0] sm:$0xff] }
  0x54   :  { %v628_v9 = vld [vmem:[%s3353_s5 + $0x770] sm:$0xff] }
  0x86   :  { %v63_v12 = vpop.f32.mrf.mxu0 }
  0x87   :  { %v83_v13 = vpop.f32.mrf.mxu1  ;;  %v64_v14 = vadd.f32 %v63_v12, %v38_v10  ;;  %v509_v10 = vld [vmem:[%s3353_s5 + $0x3b8] sm:$0xff] }
  0x88   :  { %v84_v15 = vadd.f32 %v83_v13, %v39_v11  ;;  %v397_v11 = vld [vmem:[%s3353_s5 + $0x38] sm:$0xff] }
  0x89   :  { %1461 = vtanh.f32 %v64_v14  ;;  %v733_v12 = vld [vmem:[%s3353_s5 + $0xab8] sm:$0xff]  ;;  %v502_v14 = vld [vmem:[%s3353_s5 + $0x380] sm:$0xff] }
  0x8a   :  { %1463 = vtanh.f32 %v84_v15  ;;  %v621_v13 = vld [vmem:[%s3353_s5 + $0x738] sm:$0xff]  ;;  %v390_v15 = vld [vmem:[%s3353_s5] sm:$0xff] }
  0x8f   :  { %v1462_v16 = vpop.eup %1461 }
  0x90   :  { %v1464_v19 = vpop.eup %1463  ;;  %242 = vmatmul.f32.vlgmr.msra.gmra.mxu2 %v1462_v16  ;;  %282 = vmatmul.f32.vlgmr.msrb.gmra.mxu0 %v1462_v16 }
  0x91   :  { %262 = vmatmul.f32.vlgmr.msra.gmra.mxu3 %v1464_v19  ;;  %302 = vmatmul.f32.vlgmr.msrb.gmra.mxu1 %v1464_v19 }
  0x92   :  { %874 = vmatpush.msra.mxu3 %v607_v17  ;;  %854 = vmatpush.msra.mxu2 %v495_v18  ;;  %v496_v17 = vld [vmem:[%s3353_s5 + $0x350] sm:$0xff]  ;;  %v726_v18 = vld [vmem:[%s3353_s5 + $0xa80] sm:$0xff] }
  0x93   :  { %914 = vmatpush.msrb.mxu1 %v831_v20  ;;  %894 = vmatpush.msrb.mxu0 %v719_v21  ;;  %v601_v20 = vld [vmem:[%s3353_s5 + $0x698] sm:$0xff] }
  0x94   :  { %875 = vmatpush.msra.mxu3 %v600_v22  ;;  %855 = vmatpush.msra.mxu2 %v488_v23  ;;  %v489_v21 = vld [vmem:[%s3353_s5 + $0x318] sm:$0xff]  ;;  %v832_v22 = vld [vmem:[%s3353_s5 + $0xdd0] sm:$0xff] }
  0x95   :  { %915 = vmatpush.msrb.mxu1 %v824_v24  ;;  %895 = vmatpush.msrb.mxu0 %v712_v25  ;;  %v720_v23 = vld [vmem:[%s3353_s5 + $0xa50] sm:$0xff]  ;;  %v594_v24 = vld [vmem:[%s3353_s5 + $0x660] sm:$0xff] }
  0x96   :  { %876 = vmatpush.msra.mxu3 %v593_v26  ;;  %856 = vmatpush.msra.mxu2 %v481_v27  ;;  %v482_v25 = vld [vmem:[%s3353_s5 + $0x2e0] sm:$0xff]  ;;  %v825_v26 = vld [vmem:[%s3353_s5 + $0xd98] sm:$0xff] }
  0x97   :  { %916 = vmatpush.msrb.mxu1 %v817_v28  ;;  %896 = vmatpush.msrb.mxu0 %v705_v29  ;;  %v713_v27 = vld [vmem:[%s3353_s5 + $0xa18] sm:$0xff]  ;;  %v587_v28 = vld [vmem:[%s3353_s5 + $0x628] sm:$0xff] }
  0x98   :  { %322 = vmatmul.f32.vlgmr.msrb.gmra.mxu2 %v1462_v16  ;;  %362 = vmatmul.f32.vlgmr.msra.gmra.mxu0 %v1462_v16  ;;  %v608_v16 = vld [vmem:[%s3353_s5 + $0x6d0] sm:$0xff]  ;;  %v475_v29 = vld [vmem:[%s3353_s5 + $0x2a8] sm:$0xff] }
  0x99   :  { %342 = vmatmul.f32.vlgmr.msrb.gmra.mxu3 %v1464_v19  ;;  %382 = vmatmul.f32.vlgmr.msra.gmra.mxu1 %v1464_v19  ;;  %v614_v19 = vld [vmem:[%s3353_s5 + $0x700] sm:$0xff] }
  0x9a   :  { %877 = vmatpush.msra.mxu3 %v586_v30  ;;  %857 = vmatpush.msra.mxu2 %v474_v31  ;;  %v818_v30 = vld [vmem:[%s3353_s5 + $0xd60] sm:$0xff] }
  0x9b   :  { %917 = vmatpush.msrb.mxu1 %v810_v32  ;;  %897 = vmatpush.msrb.mxu0 %v698_v33  ;;  %v706_v31 = vld [vmem:[%s3353_s5 + $0x9e0] sm:$0xff]  ;;  %v580_v32 = vld [vmem:[%s3353_s5 + $0x5f0] sm:$0xff] }
  0x9c   :  { %878 = vmatpush.msra.mxu3 %v579_v34  ;;  %858 = vmatpush.msra.mxu2 %v467_v35  ;;  %v468_v33 = vld [vmem:[%s3353_s5 + $0x270] sm:$0xff]  ;;  %v811_v34 = vld [vmem:[%s3353_s5 + $0xd28] sm:$0xff]  ;;  %v573_v35 = vld [vmem:[%s3353_s5 + $0x5b8] sm:$0xff] }
  0x9d   :  { %918 = vmatpush.msrb.mxu1 %v803_v36  ;;  %898 = vmatpush.msrb.mxu0 %v691_v37  ;;  %v461_v36 = vld [vmem:[%s3353_s5 + $0x238] sm:$0xff]  ;;  %v804_v37 = vld [vmem:[%s3353_s5 + $0xcf0] sm:$0xff] }
  0x9e   :  { %879 = vmatpush.msra.mxu3 %v572_v38  ;;  %859 = vmatpush.msra.mxu2 %v460_v39  ;;  %v566_v38 = vld [vmem:[%s3353_s5 + $0x580] sm:$0xff] }
  0x9f   :  { %919 = vmatpush.msrb.mxu1 %v796_v40  ;;  %899 = vmatpush.msrb.mxu0 %v684_v41  ;;  %v454_v39 = vld [vmem:[%s3353_s5 + $0x200] sm:$0xff]  ;;  %v797_v40 = vld [vmem:[%s3353_s5 + $0xcb8] sm:$0xff]  ;;  %v559_v41 = vld [vmem:[%s3353_s5 + $0x548] sm:$0xff] }
  0xa0   :  { %880 = vmatpush.msra.mxu3 %v565_v42  ;;  %860 = vmatpush.msra.mxu2 %v453_v43  ;;  %v552_v42 = vld [vmem:[%s3353_s5 + $0x510] sm:$0xff]  ;;  %v545_v43 = vld [vmem:[%s3353_s5 + $0x4d8] sm:$0xff] }
  0xa1   :  { %920 = vmatpush.msrb.mxu1 %v789_v44  ;;  %900 = vmatpush.msrb.mxu0 %v677_v45  ;;  %v447_v44 = vld [vmem:[%s3353_s5 + $0x1c8] sm:$0xff]  ;;  %v538_v45 = vld [vmem:[%s3353_s5 + $0x4a0] sm:$0xff] }
  0xa2   :  { %881 = vmatpush.msra.mxu3 %v558_v46  ;;  %861 = vmatpush.msra.mxu2 %v446_v47  ;;  %v699_v46 = vld [vmem:[%s3353_s5 + $0x9a8] sm:$0xff]  ;;  %v790_v47 = vld [vmem:[%s3353_s5 + $0xc80] sm:$0xff] }
  0xa3   :  { %921 = vmatpush.msrb.mxu1 %v782_v48  ;;  %901 = vmatpush.msrb.mxu0 %v670_v49  ;;  %v440_v48 = vld [vmem:[%s3353_s5 + $0x190] sm:$0xff]  ;;  %v531_v49 = vld [vmem:[%s3353_s5 + $0x468] sm:$0xff] }
  0xa4   :  { %882 = vmatpush.msra.mxu3 %v551_v50  ;;  %862 = vmatpush.msra.mxu2 %v439_v51  ;;  %v692_v50 = vld [vmem:[%s3353_s5 + $0x970] sm:$0xff]  ;;  %v783_v51 = vld [vmem:[%s3353_s5 + $0xc48] sm:$0xff] }
  0xa5   :  { %922 = vmatpush.msrb.mxu1 %v775_v52  ;;  %902 = vmatpush.msrb.mxu0 %v663_v53  ;;  %v433_v52 = vld [vmem:[%s3353_s5 + $0x158] sm:$0xff]  ;;  %v524_v53 = vld [vmem:[%s3353_s5 + $0x430] sm:$0xff] }
  0xa6   :  { %883 = vmatpush.msra.mxu3 %v544_v54  ;;  %863 = vmatpush.msra.mxu2 %v432_v55  ;;  %v685_v54 = vld [vmem:[%s3353_s5 + $0x938] sm:$0xff]  ;;  %v776_v55 = vld [vmem:[%s3353_s5 + $0xc10] sm:$0xff] }
  0xa7   :  { %923 = vmatpush.msrb.mxu1 %v768_v56  ;;  %903 = vmatpush.msrb.mxu0 %v656_v57  ;;  %v426_v56 = vld [vmem:[%s3353_s5 + $0x120] sm:$0xff]  ;;  %v517_v57 = vld [vmem:[%s3353_s5 + $0x3f8] sm:$0xff] }
  0xa8   :  { %884 = vmatpush.msra.mxu3 %v537_v58  ;;  %864 = vmatpush.msra.mxu2 %v425_v59  ;;  %v678_v58 = vld [vmem:[%s3353_s5 + $0x900] sm:$0xff]  ;;  %v769_v59 = vld [vmem:[%s3353_s5 + $0xbd8] sm:$0xff] }
  0xa9   :  { %924 = vmatpush.msrb.mxu1 %v761_v60  ;;  %904 = vmatpush.msrb.mxu0 %v649_v61  ;;  %v419_v60 = vld [vmem:[%s3353_s5 + $0xe8] sm:$0xff]  ;;  %v510_v61 = vld [vmem:[%s3353_s5 + $0x3c0] sm:$0xff] }
  0xaa   :  { %885 = vmatpush.msra.mxu3 %v530_v62  ;;  %865 = vmatpush.msra.mxu2 %v418_v63  ;;  %v671_v62 = vld [vmem:[%s3353_s5 + $0x8c8] sm:$0xff]  ;;  %v762_v63 = vld [vmem:[%s3353_s5 + $0xba0] sm:$0xff] }
  0xab   :  { %925 = vmatpush.msrb.mxu1 %v754_v0  ;;  %905 = vmatpush.msrb.mxu0 %v642_v1  ;;  %v412_v0 = vld [vmem:[%s3353_s5 + $0xb0] sm:$0xff]  ;;  %v503_v1 = vld [vmem:[%s3353_s5 + $0x388] sm:$0xff] }
  0xac   :  { %886 = vmatpush.msra.mxu3 %v523_v2  ;;  %866 = vmatpush.msra.mxu2 %v411_v3  ;;  %v664_v2 = vld [vmem:[%s3353_s5 + $0x890] sm:$0xff]  ;;  %v755_v3 = vld [vmem:[%s3353_s5 + $0xb68] sm:$0xff] }
  0xad   :  { %926 = vmatpush.msrb.mxu1 %v747_v4  ;;  %906 = vmatpush.msrb.mxu0 %v635_v5  ;;  %v405_v4 = vld [vmem:[%s3353_s5 + $0x78] sm:$0xff] }
  0xae   :  { %887 = vmatpush.msra.mxu3 %v516_v6  ;;  %867 = vmatpush.msra.mxu2 %v404_v7  ;;  %v657_v5 = vld [vmem:[%s3353_s5 + $0x858] sm:$0xff]  ;;  %v748_v6 = vld [vmem:[%s3353_s5 + $0xb30] sm:$0xff]  ;;  %v398_v7 = vld [vmem:[%s3353_s5 + $0x40] sm:$0xff] }
  0xaf   :  { %927 = vmatpush.msrb.mxu1 %v740_v8  ;;  %907 = vmatpush.msrb.mxu0 %v628_v9  ;;  %v650_v8 = vld [vmem:[%s3353_s5 + $0x820] sm:$0xff]  ;;  %v741_v9 = vld [vmem:[%s3353_s5 + $0xaf8] sm:$0xff] }
  0xb0   :  { %888 = vmatpush.msra.mxu3 %v509_v10  ;;  %868 = vmatpush.msra.mxu2 %v397_v11  ;;  %v391_v10 = vld [vmem:[%s3353_s5 + $0x8] sm:$0xff] }
  0xb1   :  { %928 = vmatpush.msrb.mxu1 %v733_v12  ;;  %908 = vmatpush.msrb.mxu0 %v621_v13  ;;  %v643_v11 = vld [vmem:[%s3353_s5 + $0x7e8] sm:$0xff]  ;;  %v734_v12 = vld [vmem:[%s3353_s5 + $0xac0] sm:$0xff]  ;;  %v636_v13 = vld [vmem:[%s3353_s5 + $0x7b0] sm:$0xff] }
  0xb2   :  { %889 = vmatpush.msra.mxu3 %v502_v14  ;;  %869 = vmatpush.msra.mxu2 %v390_v15  ;;  %v727_v14 = vld [vmem:[%s3353_s5 + $0xa88] sm:$0xff]  ;;  %v629_v15 = vld [vmem:[%s3353_s5 + $0x778] sm:$0xff] }
  0xb3   :  { %929 = vmatpush.msrb.mxu1 %v726_v18  ;;  %909 = vmatpush.msrb.mxu0 %v614_v19  ;;  %v615_v18 = vld [vmem:[%s3353_s5 + $0x708] sm:$0xff] }
  0xb4   :  { %954 = vmatpush.msrb.mxu3 %v608_v16  ;;  %934 = vmatpush.msrb.mxu2 %v496_v17  ;;  %v622_v16 = vld [vmem:[%s3353_s5 + $0x740] sm:$0xff] }
  0xb5   :  { %994 = vmatpush.msra.mxu1 %v832_v22  ;;  %974 = vmatpush.msra.mxu0 %v720_v23  ;;  %v216_v17 = vld [vmem:[%s3352_s4] sm:$0xf]  ;;  %s1449_s4 = sshll.u32 %s3355_s7, 4  ;;  %s1450_s4 = int_to_ptr.hbm [resolvable:$true] %s1449_s4 }
  0xb6   :  { %955 = vmatpush.msrb.mxu3 %v601_v20  ;;  %935 = vmatpush.msrb.mxu2 %v489_v21  ;;  %v219_v19 = vperm.slane %v216_v17, 1 }
  0xb7   :  { %995 = vmatpush.msra.mxu1 %v825_v26  ;;  %975 = vmatpush.msra.mxu0 %v713_v27 }
  0xb8   :  { %956 = vmatpush.msrb.mxu3 %v594_v24  ;;  %936 = vmatpush.msrb.mxu2 %v482_v25  ;;  %v218_v24 = vperm.slane %v216_v17, 0  ;;  %v221_v25 = vperm.slane %v216_v17, 3 }
  0xb9   :  { %996 = vmatpush.msra.mxu1 %v818_v30  ;;  %976 = vmatpush.msra.mxu0 %v706_v31 }
  0xba   :  { %957 = vmatpush.msrb.mxu3 %v587_v28  ;;  %937 = vmatpush.msrb.mxu2 %v475_v29 }
  0xbb   :  { %997 = vmatpush.msra.mxu1 %v811_v34  ;;  %977 = vmatpush.msra.mxu0 %v699_v46  ;;  %v490_v46 = vld [vmem:[%s3353_s5 + $0x320] sm:$0xff] }
  0xbc   :  { %958 = vmatpush.msrb.mxu3 %v580_v32  ;;  %938 = vmatpush.msrb.mxu2 %v468_v33  ;;  %v609_v33 = vld [vmem:[%s3353_s5 + $0x6d8] sm:$0xff] }
  0xbd   :  { %998 = vmatpush.msra.mxu1 %v804_v37  ;;  %978 = vmatpush.msra.mxu0 %v692_v50  ;;  %v602_v37 = vld [vmem:[%s3353_s5 + $0x6a0] sm:$0xff]  ;;  %v483_v50 = vld [vmem:[%s3353_s5 + $0x2e8] sm:$0xff] }
  0xbe   :  { %959 = vmatpush.msrb.mxu3 %v573_v35  ;;  %939 = vmatpush.msrb.mxu2 %v461_v36  ;;  %v220_v36 = vperm.slane %v216_v17, 2  ;;  %v427_v17 = vld [vmem:[%s3353_s5 + $0x128] sm:$0xff] }
  0xbf   :  { %999 = vmatpush.msra.mxu1 %v797_v40  ;;  %979 = vmatpush.msra.mxu0 %v685_v54  ;;  %v567_v54 = vld [vmem:[%s3353_s5 + $0x588] sm:$0xff] }
  0xc0   :  { %960 = vmatpush.msrb.mxu3 %v566_v38  ;;  %940 = vmatpush.msrb.mxu2 %v454_v39  ;;  %v595_v39 = vld [vmem:[%s3353_s5 + $0x668] sm:$0xff] }
  0xc1   :  { %1000 = vmatpush.msra.mxu1 %v790_v47  ;;  %980 = vmatpush.msra.mxu0 %v678_v58  ;;  %v581_v47 = vld [vmem:[%s3353_s5 + $0x5f8] sm:$0xff] }
  0xc2   :  { %961 = vmatpush.msrb.mxu3 %v559_v41  ;;  %941 = vmatpush.msrb.mxu2 %v447_v44  ;;  %v469_v58 = vld [vmem:[%s3353_s5 + $0x278] sm:$0xff] }
  0xc3   :  { %1001 = vmatpush.msra.mxu1 %v783_v51  ;;  %981 = vmatpush.msra.mxu0 %v671_v62  ;;  %v574_v51 = vld [vmem:[%s3353_s5 + $0x5c0] sm:$0xff] }
  0xc4   :  { %962 = vmatpush.msrb.mxu3 %v552_v42  ;;  %942 = vmatpush.msrb.mxu2 %v440_v48  ;;  %v497_v42 = vld [vmem:[%s3353_s5 + $0x358] sm:$0xff]  ;;  %v462_v62 = vld [vmem:[%s3353_s5 + $0x240] sm:$0xff] }
  0xc5   :  { %1002 = vmatpush.msra.mxu1 %v776_v55  ;;  %982 = vmatpush.msra.mxu0 %v664_v2  ;;  %v819_v55 = vld [vmem:[%s3353_s5 + $0xd68] sm:$0xff]  ;;  %v546_v2 = vld [vmem:[%s3353_s5 + $0x4e0] sm:$0xff] }
  0xc6   :  { %963 = vmatpush.msrb.mxu3 %v545_v43  ;;  %943 = vmatpush.msrb.mxu2 %v433_v52  ;;  %v588_v43 = vld [vmem:[%s3353_s5 + $0x630] sm:$0xff]  ;;  %v826_v52 = vld [vmem:[%s3353_s5 + $0xda0] sm:$0xff] }
  0xc7   :  { %1003 = vmatpush.msra.mxu1 %v769_v59  ;;  %983 = vmatpush.msra.mxu0 %v657_v5  ;;  %v721_v59 = vld [vmem:[%s3353_s5 + $0xa58] sm:$0xff]  ;;  %v448_v5 = vld [vmem:[%s3353_s5 + $0x1d0] sm:$0xff] }
  0xc8   :  { %964 = vmatpush.msrb.mxu3 %v538_v45  ;;  %944 = vmatpush.msrb.mxu2 %v426_v56  ;;  %v560_v56 = vld [vmem:[%s3353_s5 + $0x550] sm:$0xff] }
  0xc9   :  { %1004 = vmatpush.msra.mxu1 %v762_v63  ;;  %984 = vmatpush.msra.mxu0 %v650_v8  ;;  %v714_v63 = vld [vmem:[%s3353_s5 + $0xa20] sm:$0xff]  ;;  %v791_v8 = vld [vmem:[%s3353_s5 + $0xc88] sm:$0xff] }
  0xca   :  { %965 = vmatpush.msrb.mxu3 %v531_v49  ;;  %945 = vmatpush.msrb.mxu2 %v419_v60  ;;  %v833_v49 = vld [vmem:[%s3353_s5 + $0xdd8] sm:$0xff]  ;;  %v812_v60 = vld [vmem:[%s3353_s5 + $0xd30] sm:$0xff] }
  0xcb   :  { %1005 = vmatpush.msra.mxu1 %v755_v3  ;;  %985 = vmatpush.msra.mxu0 %v643_v11  ;;  %v707_v3 = vld [vmem:[%s3353_s5 + $0x9e8] sm:$0xff]  ;;  %v693_v11 = vld [vmem:[%s3353_s5 + $0x978] sm:$0xff] }
  0xcc   :  { %966 = vmatpush.msrb.mxu3 %v524_v53  ;;  %946 = vmatpush.msrb.mxu2 %v412_v0  ;;  %v476_v53 = vld [vmem:[%s3353_s5 + $0x2b0] sm:$0xff]  ;;  %v805_v0 = vld [vmem:[%s3353_s5 + $0xcf8] sm:$0xff] }
  0xcd   :  { %1006 = vmatpush.msra.mxu1 %v748_v6  ;;  %986 = vmatpush.msra.mxu0 %v636_v13  ;;  %v539_v6 = vld [vmem:[%s3353_s5 + $0x4a8] sm:$0xff]  ;;  %v434_v13 = vld [vmem:[%s3353_s5 + $0x160] sm:$0xff] }
  0xce   :  { %967 = vmatpush.msrb.mxu3 %v517_v57  ;;  %947 = vmatpush.msrb.mxu2 %v405_v4  ;;  %v798_v4 = vld [vmem:[%s3353_s5 + $0xcc0] sm:$0xff] }
  0xcf   :  { %1007 = vmatpush.msra.mxu1 %v741_v9  ;;  %987 = vmatpush.msra.mxu0 %v629_v15  ;;  %v441_v9 = vld [vmem:[%s3353_s5 + $0x198] sm:$0xff]  ;;  %v686_v15 = vld [vmem:[%s3353_s5 + $0x940] sm:$0xff] }
  0xd0   :  { %968 = vmatpush.msrb.mxu3 %v510_v61  ;;  %948 = vmatpush.msrb.mxu2 %v398_v7  ;;  %v553_v61 = vld [vmem:[%s3353_s5 + $0x518] sm:$0xff]  ;;  %v700_v7 = vld [vmem:[%s3353_s5 + $0x9b0] sm:$0xff] }
  0xd1   :  { %1008 = vmatpush.msra.mxu1 %v734_v12  ;;  %988 = vmatpush.msra.mxu0 %v622_v16  ;;  %v784_v12 = vld [vmem:[%s3353_s5 + $0xc50] sm:$0xff]  ;;  %v777_v16 = vld [vmem:[%s3353_s5 + $0xc18] sm:$0xff] }
  0xd2   :  { %969 = vmatpush.msrb.mxu3 %v503_v1  ;;  %949 = vmatpush.msrb.mxu2 %v391_v10  ;;  %v455_v1 = vld [vmem:[%s3353_s5 + $0x208] sm:$0xff]  ;;  %v532_v10 = vld [vmem:[%s3353_s5 + $0x470] sm:$0xff] }
  0xd3   :  { %1009 = vmatpush.msra.mxu1 %v727_v14  ;;  %989 = vmatpush.msra.mxu0 %v615_v18  ;;  %v525_v14 = vld [vmem:[%s3353_s5 + $0x438] sm:$0xff]  ;;  %v518_v18 = vld [vmem:[%s3353_s5 + $0x400] sm:$0xff] }
 0x10d   :  { %v283_v20 = vpop.f32.mrf.mxu0 }
 0x10e   :  { %v284_v21 = vadd.f32 %v283_v20, %v219_v19  ;;  %v303_v22 = vpop.f32.mrf.mxu1  ;;  %v679_v19 = vld [vmem:[%s3353_s5 + $0x908] sm:$0xff]  ;;  %v770_v20 = vld [vmem:[%s3353_s5 + $0xbe0] sm:$0xff] }
 0x110   :  { %v304_v23 = vadd.f32 %v303_v22, %v284_v21  ;;  %v420_v21 = vld [vmem:[%s3353_s5 + $0xf0] sm:$0xff]  ;;  %v511_v22 = vld [vmem:[%s3353_s5 + $0x3c8] sm:$0xff] }
 0x112   :  { %1465 = vtanh.f32 %v304_v23  ;;  %v672_v23 = vld [vmem:[%s3353_s5 + $0x8d0] sm:$0xff] }
 0x113   :  { %v243_v26 = vpop.f32.mrf.mxu2 }
 0x114   :  { %v244_v27 = vadd.f32 %v243_v26, %v218_v24  ;;  %v263_v28 = vpop.f32.mrf.mxu3  ;;  %v763_v24 = vld [vmem:[%s3353_s5 + $0xba8] sm:$0xff]  ;;  %v504_v26 = vld [vmem:[%s3353_s5 + $0x390] sm:$0xff] }
 0x115   :  { %v363_v29 = vpop.f32.mrf.mxu0 }
 0x116   :  { %v264_v30 = vadd.f32 %v263_v28, %v244_v27  ;;  %v364_v31 = vadd.f32 %v363_v29, %v221_v25  ;;  %v383_v32 = vpop.f32.mrf.mxu1  ;;  %v413_v25 = vld [vmem:[%s3353_s5 + $0xb8] sm:$0xff]  ;;  %v756_v28 = vld [vmem:[%s3353_s5 + $0xb70] sm:$0xff]  ;;  %v610_v29 = vld [vmem:[%s3353_s5 + $0x6e0] sm:$0xff] }
 0x117   :  { %v665_v27 = vld [vmem:[%s3353_s5 + $0x898] sm:$0xff] }
 0x118   :  { %v2344_v34 = vpop.eup %1465  ;;  %1467 = vtanh.f32 %v264_v30  ;;  %v384_v35 = vadd.f32 %v383_v32, %v364_v31  ;;  %v406_v30 = vld [vmem:[%s3353_s5 + $0x80] sm:$0xff]  ;;  %v749_v32 = vld [vmem:[%s3353_s5 + $0xb38] sm:$0xff] }
 0x119   :  { %890 = vmatmul.f32.vlgmr.msra.gmra.mxu3 %v2344_v34  ;;  %v658_v31 = vld [vmem:[%s3353_s5 + $0x860] sm:$0xff] }
 0x11a   :  { %1469 = vtanh.f32 %v384_v35  ;;  %1034 = vmatpush.msra.mxu3 %v609_v33  ;;  %v603_v33 = vld [vmem:[%s3353_s5 + $0x6a8] sm:$0xff] }
 0x11b   :  { %v323_v38 = vpop.f32.mrf.mxu2  ;;  %v399_v35 = vld [vmem:[%s3353_s5 + $0x48] sm:$0xff] }
 0x11c   :  { %v324_v40 = vadd.f32 %v323_v38, %v220_v36  ;;  %1035 = vmatpush.msra.mxu3 %v602_v37  ;;  %v343_v41 = vpop.f32.mrf.mxu3  ;;  %v651_v36 = vld [vmem:[%s3353_s5 + $0x828] sm:$0xff]  ;;  %v742_v37 = vld [vmem:[%s3353_s5 + $0xb00] sm:$0xff]  ;;  %v596_v38 = vld [vmem:[%s3353_s5 + $0x670] sm:$0xff] }
 0x11e   :  { %v2359_v44 = vpop.eup %1467  ;;  %v344_v45 = vadd.f32 %v343_v41, %v324_v40  ;;  %1036 = vmatpush.msra.mxu3 %v595_v39  ;;  %v392_v39 = vld [vmem:[%s3353_s5 + $0x10] sm:$0xff]  ;;  %v735_v41 = vld [vmem:[%s3353_s5 + $0xac8] sm:$0xff] }
 0x11f   :  { %870 = vmatmul.f32.vlgmr.msra.gmra.mxu2 %v2359_v44  ;;  %v644_v40 = vld [vmem:[%s3353_s5 + $0x7f0] sm:$0xff] }
 0x120   :  { %v2368_v48 = vpop.eup %1469  ;;  %1471 = vtanh.f32 %v344_v45  ;;  %1014 = vmatpush.msra.mxu2 %v497_v42  ;;  %1037 = vmatpush.msra.mxu3 %v588_v43  ;;  %v589_v42 = vld [vmem:[%s3353_s5 + $0x638] sm:$0xff]  ;;  %v498_v43 = vld [vmem:[%s3353_s5 + $0x360] sm:$0xff] }
 0x121   :  { %930 = vmatmul.f32.vlgmr.msrb.gmra.mxu1 %v2368_v48  ;;  %970 = vmatmul.f32.vlgmr.msrb.gmra.mxu3 %v2344_v34  ;;  %v637_v45 = vld [vmem:[%s3353_s5 + $0x7b8] sm:$0xff] }
 0x122   :  { %1015 = vmatpush.msra.mxu2 %v490_v46  ;;  %1038 = vmatpush.msra.mxu3 %v581_v47  ;;  %v728_v46 = vld [vmem:[%s3353_s5 + $0xa90] sm:$0xff]  ;;  %v582_v47 = vld [vmem:[%s3353_s5 + $0x600] sm:$0xff] }
 0x123   :  { %1074 = vmatpush.msrb.mxu1 %v833_v49  ;;  %v491_v49 = vld [vmem:[%s3353_s5 + $0x328] sm:$0xff] }
 0x124   :  { %1016 = vmatpush.msra.mxu2 %v483_v50  ;;  %1039 = vmatpush.msra.mxu3 %v574_v51  ;;  %v834_v50 = vld [vmem:[%s3353_s5 + $0xde0] sm:$0xff] }
 0x125   :  { %1075 = vmatpush.msrb.mxu1 %v826_v52  ;;  %v630_v51 = vld [vmem:[%s3353_s5 + $0x780] sm:$0xff]  ;;  %v484_v52 = vld [vmem:[%s3353_s5 + $0x2f0] sm:$0xff] }
 0x126   :  { %v2396_v57 = vpop.eup %1471  ;;  %1017 = vmatpush.msra.mxu2 %v476_v53  ;;  %1040 = vmatpush.msra.mxu3 %v567_v54  ;;  %v575_v53 = vld [vmem:[%s3353_s5 + $0x5c8] sm:$0xff] }
 0x127   :  { %1076 = vmatpush.msrb.mxu1 %v819_v55  ;;  %910 = vmatmul.f32.vlgmr.msrb.gmra.mxu0 %v2396_v57  ;;  %v827_v54 = vld [vmem:[%s3353_s5 + $0xda8] sm:$0xff] }
 0x128   :  { %950 = vmatmul.f32.vlgmr.msrb.gmra.mxu2 %v2359_v44  ;;  %1041 = vmatpush.msra.mxu3 %v560_v56  ;;  %v623_v55 = vld [vmem:[%s3353_s5 + $0x748] sm:$0xff]  ;;  %v477_v56 = vld [vmem:[%s3353_s5 + $0x2b8] sm:$0xff] }
 0x129   :  { %1018 = vmatpush.msra.mxu2 %v469_v58  ;;  %1054 = vmatpush.msrb.mxu0 %v721_v59  ;;  %v568_v58 = vld [vmem:[%s3353_s5 + $0x590] sm:$0xff] }
 0x12a   :  { %1077 = vmatpush.msrb.mxu1 %v812_v60  ;;  %1042 = vmatpush.msra.mxu3 %v553_v61  ;;  %v820_v59 = vld [vmem:[%s3353_s5 + $0xd70] sm:$0xff]  ;;  %v470_v61 = vld [vmem:[%s3353_s5 + $0x280] sm:$0xff] }
 0x12b   :  { %1010 = vmatmul.f32.vlgmr.msra.gmra.mxu1 %v2368_v48  ;;  %1019 = vmatpush.msra.mxu2 %v462_v62  ;;  %v616_v60 = vld [vmem:[%s3353_s5 + $0x710] sm:$0xff]  ;;  %v561_v62 = vld [vmem:[%s3353_s5 + $0x558] sm:$0xff] }
 0x12c   :  { %1055 = vmatpush.msrb.mxu0 %v714_v63  ;;  %1078 = vmatpush.msrb.mxu1 %v805_v0  ;;  %v722_v63 = vld [vmem:[%s3353_s5 + $0xa60] sm:$0xff]  ;;  %v813_v0 = vld [vmem:[%s3353_s5 + $0xd38] sm:$0xff] }
 0x12d   :  { %1020 = vmatpush.msra.mxu2 %v455_v1  ;;  %1043 = vmatpush.msra.mxu3 %v546_v2  ;;  %v463_v1 = vld [vmem:[%s3353_s5 + $0x248] sm:$0xff]  ;;  %v554_v2 = vld [vmem:[%s3353_s5 + $0x520] sm:$0xff] }
 0x12e   :  { %1056 = vmatpush.msrb.mxu0 %v707_v3  ;;  %1079 = vmatpush.msrb.mxu1 %v798_v4  ;;  %v715_v3 = vld [vmem:[%s3353_s5 + $0xa28] sm:$0xff]  ;;  %v806_v4 = vld [vmem:[%s3353_s5 + $0xd00] sm:$0xff] }
 0x12f   :  { %1021 = vmatpush.msra.mxu2 %v448_v5  ;;  %1044 = vmatpush.msra.mxu3 %v539_v6  ;;  %v456_v5 = vld [vmem:[%s3353_s5 + $0x210] sm:$0xff]  ;;  %v547_v6 = vld [vmem:[%s3353_s5 + $0x4e8] sm:$0xff] }
 0x130   :  { %1057 = vmatpush.msrb.mxu0 %v700_v7  ;;  %1080 = vmatpush.msrb.mxu1 %v791_v8  ;;  %v708_v7 = vld [vmem:[%s3353_s5 + $0x9f0] sm:$0xff]  ;;  %v799_v8 = vld [vmem:[%s3353_s5 + $0xcc8] sm:$0xff] }
 0x131   :  { %990 = vmatmul.f32.vlgmr.msra.gmra.mxu0 %v2396_v57  ;;  %1022 = vmatpush.msra.mxu2 %v441_v9  ;;  %v449_v9 = vld [vmem:[%s3353_s5 + $0x1d8] sm:$0xff] }
 0x132   :  { %1045 = vmatpush.msra.mxu3 %v532_v10  ;;  %1058 = vmatpush.msrb.mxu0 %v693_v11  ;;  %v540_v10 = vld [vmem:[%s3353_s5 + $0x4b0] sm:$0xff]  ;;  %v701_v11 = vld [vmem:[%s3353_s5 + $0x9b8] sm:$0xff] }
 0x133   :  { %1081 = vmatpush.msrb.mxu1 %v784_v12  ;;  %1023 = vmatpush.msra.mxu2 %v434_v13  ;;  %v792_v12 = vld [vmem:[%s3353_s5 + $0xc90] sm:$0xff]  ;;  %v442_v13 = vld [vmem:[%s3353_s5 + $0x1a0] sm:$0xff] }
 0x134   :  { %1046 = vmatpush.msra.mxu3 %v525_v14  ;;  %1059 = vmatpush.msrb.mxu0 %v686_v15  ;;  %v533_v14 = vld [vmem:[%s3353_s5 + $0x478] sm:$0xff]  ;;  %v694_v15 = vld [vmem:[%s3353_s5 + $0x980] sm:$0xff] }
 0x135   :  { %1082 = vmatpush.msrb.mxu1 %v777_v16  ;;  %1024 = vmatpush.msra.mxu2 %v427_v17  ;;  %v785_v16 = vld [vmem:[%s3353_s5 + $0xc58] sm:$0xff]  ;;  %v435_v17 = vld [vmem:[%s3353_s5 + $0x168] sm:$0xff] }
 0x136   :  { %1047 = vmatpush.msra.mxu3 %v518_v18  ;;  %1060 = vmatpush.msrb.mxu0 %v679_v19  ;;  %v526_v18 = vld [vmem:[%s3353_s5 + $0x440] sm:$0xff]  ;;  %v687_v19 = vld [vmem:[%s3353_s5 + $0x948] sm:$0xff] }
 0x137   :  { %1083 = vmatpush.msrb.mxu1 %v770_v20  ;;  %1025 = vmatpush.msra.mxu2 %v420_v21  ;;  %v778_v20 = vld [vmem:[%s3353_s5 + $0xc20] sm:$0xff]  ;;  %v428_v21 = vld [vmem:[%s3353_s5 + $0x130] sm:$0xff] }
 0x138   :  { %1048 = vmatpush.msra.mxu3 %v511_v22  ;;  %1061 = vmatpush.msrb.mxu0 %v672_v23  ;;  %v519_v22 = vld [vmem:[%s3353_s5 + $0x408] sm:$0xff]  ;;  %v680_v23 = vld [vmem:[%s3353_s5 + $0x910] sm:$0xff] }
 0x139   :  { %1084 = vmatpush.msrb.mxu1 %v763_v24  ;;  %1026 = vmatpush.msra.mxu2 %v413_v25  ;;  %v771_v24 = vld [vmem:[%s3353_s5 + $0xbe8] sm:$0xff]  ;;  %v421_v25 = vld [vmem:[%s3353_s5 + $0xf8] sm:$0xff] }
 0x13a   :  { %1049 = vmatpush.msra.mxu3 %v504_v26  ;;  %1062 = vmatpush.msrb.mxu0 %v665_v27  ;;  %v512_v26 = vld [vmem:[%s3353_s5 + $0x3d0] sm:$0xff]  ;;  %v673_v27 = vld [vmem:[%s3353_s5 + $0x8d8] sm:$0xff] }
 0x13b   :  { %1085 = vmatpush.msrb.mxu1 %v756_v28  ;;  %1050 = vmatmul.f32.vlgmr.msra.gmra.mxu3 %v2344_v34  ;;  %v764_v28 = vld [vmem:[%s3353_s5 + $0xbb0] sm:$0xff] }
 0x13c   :  { %1114 = vmatpush.msrb.mxu3 %v610_v29  ;;  %1027 = vmatpush.msra.mxu2 %v406_v30  ;;  %v414_v29 = vld [vmem:[%s3353_s5 + $0xc0] sm:$0xff]  ;;  %v505_v30 = vld [vmem:[%s3353_s5 + $0x398] sm:$0xff] }
 0x13d   :  { %1063 = vmatpush.msrb.mxu0 %v658_v31  ;;  %1086 = vmatpush.msrb.mxu1 %v749_v32  ;;  %v666_v31 = vld [vmem:[%s3353_s5 + $0x8a0] sm:$0xff]  ;;  %v757_v32 = vld [vmem:[%s3353_s5 + $0xb78] sm:$0xff] }
 0x13e   :  { %1115 = vmatpush.msrb.mxu3 %v603_v33  ;;  %1028 = vmatpush.msra.mxu2 %v399_v35  ;;  %v611_v33 = vld [vmem:[%s3353_s5 + $0x6e8] sm:$0xff] }
 0x13f   :  { %1064 = vmatpush.msrb.mxu0 %v651_v36  ;;  %1087 = vmatpush.msrb.mxu1 %v742_v37  ;;  %v407_v35 = vld [vmem:[%s3353_s5 + $0x88] sm:$0xff]  ;;  %v750_v37 = vld [vmem:[%s3353_s5 + $0xb40] sm:$0xff] }
 0x140   :  { %1116 = vmatpush.msrb.mxu3 %v596_v38  ;;  %1029 = vmatpush.msra.mxu2 %v392_v39  ;;  %v659_v36 = vld [vmem:[%s3353_s5 + $0x868] sm:$0xff]  ;;  %v604_v38 = vld [vmem:[%s3353_s5 + $0x6b0] sm:$0xff] }
 0x141   :  { %1065 = vmatpush.msrb.mxu0 %v644_v40  ;;  %1088 = vmatpush.msrb.mxu1 %v735_v41  ;;  %v400_v39 = vld [vmem:[%s3353_s5 + $0x50] sm:$0xff]  ;;  %v743_v41 = vld [vmem:[%s3353_s5 + $0xb08] sm:$0xff] }
 0x142   :  { %1030 = vmatmul.f32.vlgmr.msra.gmra.mxu2 %v2359_v44  ;;  %1117 = vmatpush.msrb.mxu3 %v589_v42  ;;  %v652_v40 = vld [vmem:[%s3353_s5 + $0x830] sm:$0xff]  ;;  %v597_v42 = vld [vmem:[%s3353_s5 + $0x678] sm:$0xff] }
 0x143   :  { %1094 = vmatpush.msrb.mxu2 %v498_v43  ;;  %1066 = vmatpush.msrb.mxu0 %v637_v45  ;;  %v393_v43 = vld [vmem:[%s3353_s5 + $0x18] sm:$0xff] }
 0x144   :  { %1089 = vmatpush.msrb.mxu1 %v728_v46  ;;  %1118 = vmatpush.msrb.mxu3 %v582_v47  ;;  %v645_v45 = vld [vmem:[%s3353_s5 + $0x7f8] sm:$0xff]  ;;  %v736_v46 = vld [vmem:[%s3353_s5 + $0xad0] sm:$0xff]  ;;  %v590_v47 = vld [vmem:[%s3353_s5 + $0x640] sm:$0xff] }
 0x145   :  { %1090 = vmatmul.f32.vlgmr.msrb.gmra.mxu1 %v2368_v48  ;;  %1095 = vmatpush.msrb.mxu2 %v491_v49  ;;  %v499_v49 = vld [vmem:[%s3353_s5 + $0x368] sm:$0xff] }
 0x146   :  { %1154 = vmatpush.msra.mxu1 %v834_v50  ;;  %1067 = vmatpush.msrb.mxu0 %v630_v51  ;;  %v638_v50 = vld [vmem:[%s3353_s5 + $0x7c0] sm:$0xff]  ;;  %v729_v51 = vld [vmem:[%s3353_s5 + $0xa98] sm:$0xff] }
 0x147   :  { %1096 = vmatpush.msrb.mxu2 %v484_v52  ;;  %1119 = vmatpush.msrb.mxu3 %v575_v53  ;;  %v583_v52 = vld [vmem:[%s3353_s5 + $0x608] sm:$0xff]  ;;  %v492_v53 = vld [vmem:[%s3353_s5 + $0x330] sm:$0xff] }
 0x148   :  { %1155 = vmatpush.msra.mxu1 %v827_v54  ;;  %1068 = vmatpush.msrb.mxu0 %v623_v55  ;;  %v835_v54 = vld [vmem:[%s3353_s5 + $0xde8] sm:$0xff] }
 0x149   :  { %1097 = vmatpush.msrb.mxu2 %v477_v56  ;;  %1120 = vmatpush.msrb.mxu3 %v568_v58  ;;  %v631_v55 = vld [vmem:[%s3353_s5 + $0x788] sm:$0xff]  ;;  %v485_v56 = vld [vmem:[%s3353_s5 + $0x2f8] sm:$0xff]  ;;  %v576_v58 = vld [vmem:[%s3353_s5 + $0x5d0] sm:$0xff] }
 0x14a   :  { %1156 = vmatpush.msra.mxu1 %v820_v59  ;;  %1069 = vmatpush.msrb.mxu0 %v616_v60  ;;  %v828_v59 = vld [vmem:[%s3353_s5 + $0xdb0] sm:$0xff] }
 0x14b   :  { %1070 = vmatmul.f32.vlgmr.msrb.gmra.mxu0 %v2396_v57  ;;  %1098 = vmatpush.msrb.mxu2 %v470_v61  ;;  %v624_v60 = vld [vmem:[%s3353_s5 + $0x750] sm:$0xff]  ;;  %v478_v61 = vld [vmem:[%s3353_s5 + $0x2c0] sm:$0xff] }
 0x14c   :  { %1121 = vmatpush.msrb.mxu3 %v561_v62  ;;  %1134 = vmatpush.msra.mxu0 %v722_v63  ;;  %v569_v62 = vld [vmem:[%s3353_s5 + $0x598] sm:$0xff] }
 0x14d   :  { %1157 = vmatpush.msra.mxu1 %v813_v0  ;;  %1099 = vmatpush.msrb.mxu2 %v463_v1  ;;  %v821_v63 = vld [vmem:[%s3353_s5 + $0xd78] sm:$0xff]  ;;  %v471_v1 = vld [vmem:[%s3353_s5 + $0x288] sm:$0xff] }
 0x14e   :  { %1122 = vmatpush.msrb.mxu3 %v554_v2  ;;  %1135 = vmatpush.msra.mxu0 %v715_v3  ;;  %v617_v0 = vld [vmem:[%s3353_s5 + $0x718] sm:$0xff]  ;;  %v562_v2 = vld [vmem:[%s3353_s5 + $0x560] sm:$0xff]  ;;  %v723_v3 = vld [vmem:[%s3353_s5 + $0xa68] sm:$0xff] }
 0x14f   :  { %1158 = vmatpush.msra.mxu1 %v806_v4  ;;  %1100 = vmatpush.msrb.mxu2 %v456_v5  ;;  %v814_v4 = vld [vmem:[%s3353_s5 + $0xd40] sm:$0xff]  ;;  %v464_v5 = vld [vmem:[%s3353_s5 + $0x250] sm:$0xff] }
 0x150   :  { %1123 = vmatpush.msrb.mxu3 %v547_v6  ;;  %1136 = vmatpush.msra.mxu0 %v708_v7  ;;  %v555_v6 = vld [vmem:[%s3353_s5 + $0x528] sm:$0xff]  ;;  %v716_v7 = vld [vmem:[%s3353_s5 + $0xa30] sm:$0xff] }
 0x151   :  { %1159 = vmatpush.msra.mxu1 %v799_v8  ;;  %1101 = vmatpush.msrb.mxu2 %v449_v9  ;;  %v807_v8 = vld [vmem:[%s3353_s5 + $0xd08] sm:$0xff]  ;;  %v457_v9 = vld [vmem:[%s3353_s5 + $0x218] sm:$0xff] }
 0x152   :  { %1124 = vmatpush.msrb.mxu3 %v540_v10  ;;  %1137 = vmatpush.msra.mxu0 %v701_v11  ;;  %v548_v10 = vld [vmem:[%s3353_s5 + $0x4f0] sm:$0xff]  ;;  %v709_v11 = vld [vmem:[%s3353_s5 + $0x9f8] sm:$0xff] }
 0x153   :  { %1160 = vmatpush.msra.mxu1 %v792_v12  ;;  %1102 = vmatpush.msrb.mxu2 %v442_v13  ;;  %v800_v12 = vld [vmem:[%s3353_s5 + $0xcd0] sm:$0xff]  ;;  %v450_v13 = vld [vmem:[%s3353_s5 + $0x1e0] sm:$0xff] }
 0x154   :  { %1125 = vmatpush.msrb.mxu3 %v533_v14  ;;  %1138 = vmatpush.msra.mxu0 %v694_v15  ;;  %v541_v14 = vld [vmem:[%s3353_s5 + $0x4b8] sm:$0xff]  ;;  %v702_v15 = vld [vmem:[%s3353_s5 + $0x9c0] sm:$0xff] }
 0x155   :  { %1161 = vmatpush.msra.mxu1 %v785_v16  ;;  %1103 = vmatpush.msrb.mxu2 %v435_v17  ;;  %v793_v16 = vld [vmem:[%s3353_s5 + $0xc98] sm:$0xff]  ;;  %v443_v17 = vld [vmem:[%s3353_s5 + $0x1a8] sm:$0xff] }
 0x156   :  { %1126 = vmatpush.msrb.mxu3 %v526_v18  ;;  %1139 = vmatpush.msra.mxu0 %v687_v19  ;;  %v534_v18 = vld [vmem:[%s3353_s5 + $0x480] sm:$0xff]  ;;  %v695_v19 = vld [vmem:[%s3353_s5 + $0x988] sm:$0xff] }
 0x157   :  { %1162 = vmatpush.msra.mxu1 %v778_v20  ;;  %1104 = vmatpush.msrb.mxu2 %v428_v21  ;;  %v786_v20 = vld [vmem:[%s3353_s5 + $0xc60] sm:$0xff]  ;;  %v436_v21 = vld [vmem:[%s3353_s5 + $0x170] sm:$0xff] }
 0x158   :  { %1127 = vmatpush.msrb.mxu3 %v519_v22  ;;  %1140 = vmatpush.msra.mxu0 %v680_v23  ;;  %v527_v22 = vld [vmem:[%s3353_s5 + $0x448] sm:$0xff]  ;;  %v688_v23 = vld [vmem:[%s3353_s5 + $0x950] sm:$0xff] }
 0x159   :  { %1163 = vmatpush.msra.mxu1 %v771_v24  ;;  %1105 = vmatpush.msrb.mxu2 %v421_v25  ;;  %v779_v24 = vld [vmem:[%s3353_s5 + $0xc28] sm:$0xff]  ;;  %v429_v25 = vld [vmem:[%s3353_s5 + $0x138] sm:$0xff] }
 0x15a   :  { %1128 = vmatpush.msrb.mxu3 %v512_v26  ;;  %1141 = vmatpush.msra.mxu0 %v673_v27  ;;  %v520_v26 = vld [vmem:[%s3353_s5 + $0x410] sm:$0xff]  ;;  %v681_v27 = vld [vmem:[%s3353_s5 + $0x918] sm:$0xff] }
 0x15b   :  { %1164 = vmatpush.msra.mxu1 %v764_v28  ;;  %1106 = vmatpush.msrb.mxu2 %v414_v29  ;;  %v772_v28 = vld [vmem:[%s3353_s5 + $0xbf0] sm:$0xff]  ;;  %v422_v29 = vld [vmem:[%s3353_s5 + $0x100] sm:$0xff] }
 0x15c   :  { %1129 = vmatpush.msrb.mxu3 %v505_v30  ;;  %1142 = vmatpush.msra.mxu0 %v666_v31  ;;  %v513_v30 = vld [vmem:[%s3353_s5 + $0x3d8] sm:$0xff]  ;;  %v674_v31 = vld [vmem:[%s3353_s5 + $0x8e0] sm:$0xff] }
 0x15d   :  { %1165 = vmatpush.msra.mxu1 %v757_v32  ;;  %1130 = vmatmul.f32.vlgmr.msrb.gmra.mxu3 %v2344_v34  ;;  %v765_v32 = vld [vmem:[%s3353_s5 + $0xbb8] sm:$0xff] }
 0x15e   :  { %1194 = vmatpush.msra.mxu3 %v611_v33  ;;  %1107 = vmatpush.msrb.mxu2 %v407_v35  ;;  %v415_v33 = vld [vmem:[%s3353_s5 + $0xc8] sm:$0xff]  ;;  %v506_v35 = vld [vmem:[%s3353_s5 + $0x3a0] sm:$0xff] }
 0x15f   :  { %1143 = vmatpush.msra.mxu0 %v659_v36  ;;  %1166 = vmatpush.msra.mxu1 %v750_v37  ;;  %v667_v36 = vld [vmem:[%s3353_s5 + $0x8a8] sm:$0xff]  ;;  %v758_v37 = vld [vmem:[%s3353_s5 + $0xb80] sm:$0xff] }
 0x160   :  { %1195 = vmatpush.msra.mxu3 %v604_v38  ;;  %1108 = vmatpush.msrb.mxu2 %v400_v39  ;;  %v612_v38 = vld [vmem:[%s3353_s5 + $0x6f0] sm:$0xff] }
 0x161   :  { %1144 = vmatpush.msra.mxu0 %v652_v40  ;;  %1167 = vmatpush.msra.mxu1 %v743_v41  ;;  %v408_v39 = vld [vmem:[%s3353_s5 + $0x90] sm:$0xff]  ;;  %v751_v41 = vld [vmem:[%s3353_s5 + $0xb48] sm:$0xff] }
 0x162   :  { %1196 = vmatpush.msra.mxu3 %v597_v42  ;;  %1109 = vmatpush.msrb.mxu2 %v393_v43  ;;  %v660_v40 = vld [vmem:[%s3353_s5 + $0x870] sm:$0xff]  ;;  %v605_v42 = vld [vmem:[%s3353_s5 + $0x6b8] sm:$0xff] }
 0x163   :  { %1145 = vmatpush.msra.mxu0 %v645_v45  ;;  %1168 = vmatpush.msra.mxu1 %v736_v46  ;;  %v401_v43 = vld [vmem:[%s3353_s5 + $0x58] sm:$0xff]  ;;  %v744_v46 = vld [vmem:[%s3353_s5 + $0xb10] sm:$0xff] }
 0x164   :  { %1110 = vmatmul.f32.vlgmr.msrb.gmra.mxu2 %v2359_v44  ;;  %1197 = vmatpush.msra.mxu3 %v590_v47  ;;  %v653_v45 = vld [vmem:[%s3353_s5 + $0x838] sm:$0xff]  ;;  %v598_v47 = vld [vmem:[%s3353_s5 + $0x680] sm:$0xff] }
 0x165   :  { %1174 = vmatpush.msra.mxu2 %v499_v49  ;;  %1146 = vmatpush.msra.mxu0 %v638_v50  ;;  %v394_v49 = vld [vmem:[%s3353_s5 + $0x20] sm:$0xff] }
 0x166   :  { %1169 = vmatpush.msra.mxu1 %v729_v51  ;;  %1198 = vmatpush.msra.mxu3 %v583_v52  ;;  %v646_v50 = vld [vmem:[%s3353_s5 + $0x800] sm:$0xff]  ;;  %v737_v51 = vld [vmem:[%s3353_s5 + $0xad8] sm:$0xff]  ;;  %v591_v52 = vld [vmem:[%s3353_s5 + $0x648] sm:$0xff] }
 0x167   :  { %1170 = vmatmul.f32.vlgmr.msra.gmra.mxu1 %v2368_v48  ;;  %1175 = vmatpush.msra.mxu2 %v492_v53  ;;  %v500_v53 = vld [vmem:[%s3353_s5 + $0x370] sm:$0xff] }
 0x168   :  { %1234 = vmatpush.msrb.mxu1 %v835_v54  ;;  %1147 = vmatpush.msra.mxu0 %v631_v55  ;;  %v639_v54 = vld [vmem:[%s3353_s5 + $0x7c8] sm:$0xff]  ;;  %v730_v55 = vld [vmem:[%s3353_s5 + $0xaa0] sm:$0xff] }
 0x169   :  { %1176 = vmatpush.msra.mxu2 %v485_v56  ;;  %1199 = vmatpush.msra.mxu3 %v576_v58  ;;  %v584_v56 = vld [vmem:[%s3353_s5 + $0x610] sm:$0xff]  ;;  %v493_v58 = vld [vmem:[%s3353_s5 + $0x338] sm:$0xff] }
 0x16a   :  { %1235 = vmatpush.msrb.mxu1 %v828_v59  ;;  %1148 = vmatpush.msra.mxu0 %v624_v60  ;;  %v836_v59 = vld [vmem:[%s3353_s5 + $0xdf0] sm:$0xff] }
 0x16b   :  { %1177 = vmatpush.msra.mxu2 %v478_v61  ;;  %1200 = vmatpush.msra.mxu3 %v569_v62  ;;  %v632_v60 = vld [vmem:[%s3353_s5 + $0x790] sm:$0xff]  ;;  %v486_v61 = vld [vmem:[%s3353_s5 + $0x300] sm:$0xff]  ;;  %v577_v62 = vld [vmem:[%s3353_s5 + $0x5d8] sm:$0xff] }
 0x16c   :  { %1236 = vmatpush.msrb.mxu1 %v821_v63  ;;  %1149 = vmatpush.msra.mxu0 %v617_v0  ;;  %v829_v63 = vld [vmem:[%s3353_s5 + $0xdb8] sm:$0xff] }
 0x16d   :  { %1150 = vmatmul.f32.vlgmr.msra.gmra.mxu0 %v2396_v57  ;;  %1178 = vmatpush.msra.mxu2 %v471_v1  ;;  %v625_v0 = vld [vmem:[%s3353_s5 + $0x758] sm:$0xff]  ;;  %v479_v1 = vld [vmem:[%s3353_s5 + $0x2c8] sm:$0xff] }
 0x16e   :  { %1201 = vmatpush.msra.mxu3 %v562_v2  ;;  %1214 = vmatpush.msrb.mxu0 %v723_v3  ;;  %v570_v2 = vld [vmem:[%s3353_s5 + $0x5a0] sm:$0xff] }
 0x16f   :  { %1237 = vmatpush.msrb.mxu1 %v814_v4  ;;  %1179 = vmatpush.msra.mxu2 %v464_v5  ;;  %v822_v3 = vld [vmem:[%s3353_s5 + $0xd80] sm:$0xff]  ;;  %v472_v5 = vld [vmem:[%s3353_s5 + $0x290] sm:$0xff] }
 0x170   :  { %1202 = vmatpush.msra.mxu3 %v555_v6  ;;  %1215 = vmatpush.msrb.mxu0 %v716_v7  ;;  %v618_v4 = vld [vmem:[%s3353_s5 + $0x720] sm:$0xff]  ;;  %v563_v6 = vld [vmem:[%s3353_s5 + $0x568] sm:$0xff]  ;;  %v724_v7 = vld [vmem:[%s3353_s5 + $0xa70] sm:$0xff] }
 0x171   :  { %1238 = vmatpush.msrb.mxu1 %v807_v8  ;;  %1180 = vmatpush.msra.mxu2 %v457_v9  ;;  %v815_v8 = vld [vmem:[%s3353_s5 + $0xd48] sm:$0xff]  ;;  %v465_v9 = vld [vmem:[%s3353_s5 + $0x258] sm:$0xff] }
 0x172   :  { %1203 = vmatpush.msra.mxu3 %v548_v10  ;;  %1216 = vmatpush.msrb.mxu0 %v709_v11  ;;  %v556_v10 = vld [vmem:[%s3353_s5 + $0x530] sm:$0xff]  ;;  %v717_v11 = vld [vmem:[%s3353_s5 + $0xa38] sm:$0xff] }
 0x173   :  { %1239 = vmatpush.msrb.mxu1 %v800_v12  ;;  %1181 = vmatpush.msra.mxu2 %v450_v13  ;;  %v808_v12 = vld [vmem:[%s3353_s5 + $0xd10] sm:$0xff]  ;;  %v458_v13 = vld [vmem:[%s3353_s5 + $0x220] sm:$0xff] }
 0x174   :  { %1204 = vmatpush.msra.mxu3 %v541_v14  ;;  %1217 = vmatpush.msrb.mxu0 %v702_v15  ;;  %v549_v14 = vld [vmem:[%s3353_s5 + $0x4f8] sm:$0xff]  ;;  %v710_v15 = vld [vmem:[%s3353_s5 + $0xa00] sm:$0xff] }
 0x175   :  { %1240 = vmatpush.msrb.mxu1 %v793_v16  ;;  %1182 = vmatpush.msra.mxu2 %v443_v17  ;;  %v801_v16 = vld [vmem:[%s3353_s5 + $0xcd8] sm:$0xff]  ;;  %v451_v17 = vld [vmem:[%s3353_s5 + $0x1e8] sm:$0xff] }
 0x176   :  { %1205 = vmatpush.msra.mxu3 %v534_v18  ;;  %1218 = vmatpush.msrb.mxu0 %v695_v19  ;;  %v542_v18 = vld [vmem:[%s3353_s5 + $0x4c0] sm:$0xff]  ;;  %v703_v19 = vld [vmem:[%s3353_s5 + $0x9c8] sm:$0xff] }
 0x177   :  { %1241 = vmatpush.msrb.mxu1 %v786_v20  ;;  %1183 = vmatpush.msra.mxu2 %v436_v21  ;;  %v794_v20 = vld [vmem:[%s3353_s5 + $0xca0] sm:$0xff]  ;;  %v444_v21 = vld [vmem:[%s3353_s5 + $0x1b0] sm:$0xff] }
 0x178   :  { %1206 = vmatpush.msra.mxu3 %v527_v22  ;;  %1219 = vmatpush.msrb.mxu0 %v688_v23  ;;  %v535_v22 = vld [vmem:[%s3353_s5 + $0x488] sm:$0xff]  ;;  %v696_v23 = vld [vmem:[%s3353_s5 + $0x990] sm:$0xff] }
 0x179   :  { %1242 = vmatpush.msrb.mxu1 %v779_v24  ;;  %1184 = vmatpush.msra.mxu2 %v429_v25  ;;  %v787_v24 = vld [vmem:[%s3353_s5 + $0xc68] sm:$0xff]  ;;  %v437_v25 = vld [vmem:[%s3353_s5 + $0x178] sm:$0xff] }
 0x17a   :  { %1207 = vmatpush.msra.mxu3 %v520_v26  ;;  %1220 = vmatpush.msrb.mxu0 %v681_v27  ;;  %v528_v26 = vld [vmem:[%s3353_s5 + $0x450] sm:$0xff]  ;;  %v689_v27 = vld [vmem:[%s3353_s5 + $0x958] sm:$0xff] }
 0x17b   :  { %1243 = vmatpush.msrb.mxu1 %v772_v28  ;;  %1185 = vmatpush.msra.mxu2 %v422_v29  ;;  %v780_v28 = vld [vmem:[%s3353_s5 + $0xc30] sm:$0xff]  ;;  %v430_v29 = vld [vmem:[%s3353_s5 + $0x140] sm:$0xff] }
 0x17c   :  { %1208 = vmatpush.msra.mxu3 %v513_v30  ;;  %1221 = vmatpush.msrb.mxu0 %v674_v31  ;;  %v521_v30 = vld [vmem:[%s3353_s5 + $0x418] sm:$0xff]  ;;  %v682_v31 = vld [vmem:[%s3353_s5 + $0x920] sm:$0xff] }
 0x17d   :  { %1244 = vmatpush.msrb.mxu1 %v765_v32  ;;  %1186 = vmatpush.msra.mxu2 %v415_v33  ;;  %v773_v32 = vld [vmem:[%s3353_s5 + $0xbf8] sm:$0xff]  ;;  %v423_v33 = vld [vmem:[%s3353_s5 + $0x108] sm:$0xff] }
 0x17e   :  { %1209 = vmatpush.msra.mxu3 %v506_v35  ;;  %1222 = vmatpush.msrb.mxu0 %v667_v36  ;;  %v514_v35 = vld [vmem:[%s3353_s5 + $0x3e0] sm:$0xff]  ;;  %v675_v36 = vld [vmem:[%s3353_s5 + $0x8e8] sm:$0xff] }
 0x17f   :  { %1245 = vmatpush.msrb.mxu1 %v758_v37  ;;  %1210 = vmatmul.f32.vlgmr.msra.gmra.mxu3 %v2344_v34  ;;  %v766_v37 = vld [vmem:[%s3353_s5 + $0xbc0] sm:$0xff] }
 0x180   :  { %1274 = vmatpush.msrb.mxu3 %v612_v38  ;;  %1187 = vmatpush.msra.mxu2 %v408_v39  ;;  %v416_v38 = vld [vmem:[%s3353_s5 + $0xd0] sm:$0xff]  ;;  %v507_v39 = vld [vmem:[%s3353_s5 + $0x3a8] sm:$0xff] }
 0x181   :  { %1223 = vmatpush.msrb.mxu0 %v660_v40  ;;  %1246 = vmatpush.msrb.mxu1 %v751_v41  ;;  %v668_v40 = vld [vmem:[%s3353_s5 + $0x8b0] sm:$0xff]  ;;  %v759_v41 = vld [vmem:[%s3353_s5 + $0xb88] sm:$0xff] }
 0x182   :  { %1275 = vmatpush.msrb.mxu3 %v605_v42  ;;  %1188 = vmatpush.msra.mxu2 %v401_v43  ;;  %v613_v42 = vld [vmem:[%s3353_s5 + $0x6f8] sm:$0xff] }
 0x183   :  { %1224 = vmatpush.msrb.mxu0 %v653_v45  ;;  %1247 = vmatpush.msrb.mxu1 %v744_v46  ;;  %v409_v43 = vld [vmem:[%s3353_s5 + $0x98] sm:$0xff]  ;;  %v752_v46 = vld [vmem:[%s3353_s5 + $0xb50] sm:$0xff] }
 0x184   :  { %1276 = vmatpush.msrb.mxu3 %v598_v47  ;;  %1189 = vmatpush.msra.mxu2 %v394_v49  ;;  %v661_v45 = vld [vmem:[%s3353_s5 + $0x878] sm:$0xff]  ;;  %v606_v47 = vld [vmem:[%s3353_s5 + $0x6c0] sm:$0xff] }
 0x185   :  { %1225 = vmatpush.msrb.mxu0 %v646_v50  ;;  %1248 = vmatpush.msrb.mxu1 %v737_v51  ;;  %v402_v49 = vld [vmem:[%s3353_s5 + $0x60] sm:$0xff]  ;;  %v745_v51 = vld [vmem:[%s3353_s5 + $0xb18] sm:$0xff] }
 0x186   :  { %1190 = vmatmul.f32.vlgmr.msra.gmra.mxu2 %v2359_v44  ;;  %1277 = vmatpush.msrb.mxu3 %v591_v52  ;;  %v654_v50 = vld [vmem:[%s3353_s5 + $0x840] sm:$0xff]  ;;  %v599_v52 = vld [vmem:[%s3353_s5 + $0x688] sm:$0xff] }
 0x187   :  { %1254 = vmatpush.msrb.mxu2 %v500_v53  ;;  %1226 = vmatpush.msrb.mxu0 %v639_v54  ;;  %v395_v53 = vld [vmem:[%s3353_s5 + $0x28] sm:$0xff] }
 0x188   :  { %1249 = vmatpush.msrb.mxu1 %v730_v55  ;;  %1278 = vmatpush.msrb.mxu3 %v584_v56  ;;  %v647_v54 = vld [vmem:[%s3353_s5 + $0x808] sm:$0xff]  ;;  %v738_v55 = vld [vmem:[%s3353_s5 + $0xae0] sm:$0xff]  ;;  %v592_v56 = vld [vmem:[%s3353_s5 + $0x650] sm:$0xff] }
 0x189   :  { %1250 = vmatmul.f32.vlgmr.msrb.gmra.mxu1 %v2368_v48  ;;  %1255 = vmatpush.msrb.mxu2 %v493_v58  ;;  %v501_v58 = vld [vmem:[%s3353_s5 + $0x378] sm:$0xff] }
 0x18a   :  { %1314 = vmatpush.msra.mxu1 %v836_v59  ;;  %1227 = vmatpush.msrb.mxu0 %v632_v60  ;;  %v640_v59 = vld [vmem:[%s3353_s5 + $0x7d0] sm:$0xff]  ;;  %v731_v60 = vld [vmem:[%s3353_s5 + $0xaa8] sm:$0xff] }
 0x18b   :  { %1256 = vmatpush.msrb.mxu2 %v486_v61  ;;  %1279 = vmatpush.msrb.mxu3 %v577_v62  ;;  %v585_v61 = vld [vmem:[%s3353_s5 + $0x618] sm:$0xff]  ;;  %v494_v62 = vld [vmem:[%s3353_s5 + $0x340] sm:$0xff] }
 0x18c   :  { %1315 = vmatpush.msra.mxu1 %v829_v63  ;;  %1228 = vmatpush.msrb.mxu0 %v625_v0  ;;  %v837_v63 = vld [vmem:[%s3353_s5 + $0xdf8] sm:$0xff] }
 0x18d   :  { %1257 = vmatpush.msrb.mxu2 %v479_v1  ;;  %1280 = vmatpush.msrb.mxu3 %v570_v2  ;;  %v633_v0 = vld [vmem:[%s3353_s5 + $0x798] sm:$0xff]  ;;  %v487_v1 = vld [vmem:[%s3353_s5 + $0x308] sm:$0xff]  ;;  %v578_v2 = vld [vmem:[%s3353_s5 + $0x5e0] sm:$0xff] }
 0x18e   :  { %1316 = vmatpush.msra.mxu1 %v822_v3  ;;  %1229 = vmatpush.msrb.mxu0 %v618_v4  ;;  %v830_v3 = vld [vmem:[%s3353_s5 + $0xdc0] sm:$0xff] }
 0x18f   :  { %1230 = vmatmul.f32.vlgmr.msrb.gmra.mxu0 %v2396_v57  ;;  %1258 = vmatpush.msrb.mxu2 %v472_v5  ;;  %v626_v4 = vld [vmem:[%s3353_s5 + $0x760] sm:$0xff]  ;;  %v480_v5 = vld [vmem:[%s3353_s5 + $0x2d0] sm:$0xff] }
 0x190   :  { %1281 = vmatpush.msrb.mxu3 %v563_v6  ;;  %1294 = vmatpush.msra.mxu0 %v724_v7  ;;  %v571_v6 = vld [vmem:[%s3353_s5 + $0x5a8] sm:$0xff] }
 0x191   :  { %1317 = vmatpush.msra.mxu1 %v815_v8  ;;  %1259 = vmatpush.msrb.mxu2 %v465_v9  ;;  %v823_v7 = vld [vmem:[%s3353_s5 + $0xd88] sm:$0xff]  ;;  %v473_v9 = vld [vmem:[%s3353_s5 + $0x298] sm:$0xff] }
 0x192   :  { %1282 = vmatpush.msrb.mxu3 %v556_v10  ;;  %1295 = vmatpush.msra.mxu0 %v717_v11  ;;  %v619_v8 = vld [vmem:[%s3353_s5 + $0x728] sm:$0xff]  ;;  %v564_v10 = vld [vmem:[%s3353_s5 + $0x570] sm:$0xff]  ;;  %v725_v11 = vld [vmem:[%s3353_s5 + $0xa78] sm:$0xff] }
 0x193   :  { %1318 = vmatpush.msra.mxu1 %v808_v12  ;;  %1260 = vmatpush.msrb.mxu2 %v458_v13  ;;  %v816_v12 = vld [vmem:[%s3353_s5 + $0xd50] sm:$0xff]  ;;  %v466_v13 = vld [vmem:[%s3353_s5 + $0x260] sm:$0xff] }
 0x194   :  { %1283 = vmatpush.msrb.mxu3 %v549_v14  ;;  %1296 = vmatpush.msra.mxu0 %v710_v15  ;;  %v557_v14 = vld [vmem:[%s3353_s5 + $0x538] sm:$0xff]  ;;  %v718_v15 = vld [vmem:[%s3353_s5 + $0xa40] sm:$0xff] }
 0x195   :  { %1319 = vmatpush.msra.mxu1 %v801_v16  ;;  %1261 = vmatpush.msrb.mxu2 %v451_v17  ;;  %v809_v16 = vld [vmem:[%s3353_s5 + $0xd18] sm:$0xff]  ;;  %v459_v17 = vld [vmem:[%s3353_s5 + $0x228] sm:$0xff] }
 0x196   :  { %1284 = vmatpush.msrb.mxu3 %v542_v18  ;;  %1297 = vmatpush.msra.mxu0 %v703_v19  ;;  %v550_v18 = vld [vmem:[%s3353_s5 + $0x500] sm:$0xff]  ;;  %v711_v19 = vld [vmem:[%s3353_s5 + $0xa08] sm:$0xff] }
 0x197   :  { %1320 = vmatpush.msra.mxu1 %v794_v20  ;;  %1262 = vmatpush.msrb.mxu2 %v444_v21  ;;  %v802_v20 = vld [vmem:[%s3353_s5 + $0xce0] sm:$0xff]  ;;  %v452_v21 = vld [vmem:[%s3353_s5 + $0x1f0] sm:$0xff] }
 0x198   :  { %1285 = vmatpush.msrb.mxu3 %v535_v22  ;;  %1298 = vmatpush.msra.mxu0 %v696_v23  ;;  %v543_v22 = vld [vmem:[%s3353_s5 + $0x4c8] sm:$0xff]  ;;  %v704_v23 = vld [vmem:[%s3353_s5 + $0x9d0] sm:$0xff] }
 0x199   :  { %1321 = vmatpush.msra.mxu1 %v787_v24  ;;  %1263 = vmatpush.msrb.mxu2 %v437_v25  ;;  %v795_v24 = vld [vmem:[%s3353_s5 + $0xca8] sm:$0xff]  ;;  %v445_v25 = vld [vmem:[%s3353_s5 + $0x1b8] sm:$0xff] }
 0x19a   :  { %1286 = vmatpush.msrb.mxu3 %v528_v26  ;;  %1299 = vmatpush.msra.mxu0 %v689_v27  ;;  %v536_v26 = vld [vmem:[%s3353_s5 + $0x490] sm:$0xff]  ;;  %v697_v27 = vld [vmem:[%s3353_s5 + $0x998] sm:$0xff] }
 0x19b   :  { %1322 = vmatpush.msra.mxu1 %v780_v28  ;;  %1264 = vmatpush.msrb.mxu2 %v430_v29  ;;  %v788_v28 = vld [vmem:[%s3353_s5 + $0xc70] sm:$0xff]  ;;  %v438_v29 = vld [vmem:[%s3353_s5 + $0x180] sm:$0xff] }
 0x19c   :  { %1287 = vmatpush.msrb.mxu3 %v521_v30  ;;  %1300 = vmatpush.msra.mxu0 %v682_v31  ;;  %v529_v30 = vld [vmem:[%s3353_s5 + $0x458] sm:$0xff]  ;;  %v690_v31 = vld [vmem:[%s3353_s5 + $0x960] sm:$0xff] }
 0x19d   :  { %1323 = vmatpush.msra.mxu1 %v773_v32  ;;  %1265 = vmatpush.msrb.mxu2 %v423_v33  ;;  %v781_v32 = vld [vmem:[%s3353_s5 + $0xc38] sm:$0xff]  ;;  %v431_v33 = vld [vmem:[%s3353_s5 + $0x148] sm:$0xff] }
 0x19e   :  { %1288 = vmatpush.msrb.mxu3 %v514_v35  ;;  %1301 = vmatpush.msra.mxu0 %v675_v36  ;;  %v522_v35 = vld [vmem:[%s3353_s5 + $0x420] sm:$0xff]  ;;  %v683_v36 = vld [vmem:[%s3353_s5 + $0x928] sm:$0xff] }
 0x19f   :  { %1324 = vmatpush.msra.mxu1 %v766_v37  ;;  %1266 = vmatpush.msrb.mxu2 %v416_v38  ;;  %v774_v37 = vld [vmem:[%s3353_s5 + $0xc00] sm:$0xff]  ;;  %v424_v38 = vld [vmem:[%s3353_s5 + $0x110] sm:$0xff] }
 0x1a0   :  { %1289 = vmatpush.msrb.mxu3 %v507_v39  ;;  %1302 = vmatpush.msra.mxu0 %v668_v40  ;;  %v515_v39 = vld [vmem:[%s3353_s5 + $0x3e8] sm:$0xff]  ;;  %v676_v40 = vld [vmem:[%s3353_s5 + $0x8f0] sm:$0xff] }
 0x1a1   :  { %1325 = vmatpush.msra.mxu1 %v759_v41  ;;  %1290 = vmatmul.f32.vlgmr.msrb.gmra.mxu3 %v2344_v34  ;;  %v767_v41 = vld [vmem:[%s3353_s5 + $0xbc8] sm:$0xff] }
 0x1a2   :  { %1354 = vmatpush.msra.mxu3 %v613_v42  ;;  %1267 = vmatpush.msrb.mxu2 %v409_v43  ;;  %v417_v42 = vld [vmem:[%s3353_s5 + $0xd8] sm:$0xff]  ;;  %v508_v43 = vld [vmem:[%s3353_s5 + $0x3b0] sm:$0xff] }
 0x1a3   :  { %1303 = vmatpush.msra.mxu0 %v661_v45  ;;  %1326 = vmatpush.msra.mxu1 %v752_v46  ;;  %v669_v45 = vld [vmem:[%s3353_s5 + $0x8b8] sm:$0xff]  ;;  %v760_v46 = vld [vmem:[%s3353_s5 + $0xb90] sm:$0xff] }
 0x1a4   :  { %1355 = vmatpush.msra.mxu3 %v606_v47  ;;  %1268 = vmatpush.msrb.mxu2 %v402_v49  ;;  %v410_v47 = vld [vmem:[%s3353_s5 + $0xa0] sm:$0xff] }
 0x1a5   :  { %1304 = vmatpush.msra.mxu0 %v654_v50  ;;  %1327 = vmatpush.msra.mxu1 %v745_v51  ;;  %v662_v49 = vld [vmem:[%s3353_s5 + $0x880] sm:$0xff]  ;;  %v753_v50 = vld [vmem:[%s3353_s5 + $0xb58] sm:$0xff]  ;;  %v403_v51 = vld [vmem:[%s3353_s5 + $0x68] sm:$0xff] }
 0x1a6   :  { %1356 = vmatpush.msra.mxu3 %v599_v52  ;;  %1269 = vmatpush.msrb.mxu2 %v395_v53  ;;  %v655_v52 = vld [vmem:[%s3353_s5 + $0x848] sm:$0xff]  ;;  %v746_v53 = vld [vmem:[%s3353_s5 + $0xb20] sm:$0xff] }
 0x1a7   :  { %1305 = vmatpush.msra.mxu0 %v647_v54  ;;  %1328 = vmatpush.msra.mxu1 %v738_v55  ;;  %v396_v54 = vld [vmem:[%s3353_s5 + $0x30] sm:$0xff]  ;;  %v739_v55 = vld [vmem:[%s3353_s5 + $0xae8] sm:$0xff] }
 0x1a8   :  { %1270 = vmatmul.f32.vlgmr.msrb.gmra.mxu2 %v2359_v44  ;;  %1357 = vmatpush.msra.mxu3 %v592_v56  ;;  %v641_v56 = vld [vmem:[%s3353_s5 + $0x7d8] sm:$0xff] }
 0x1a9   :  { %1334 = vmatpush.msra.mxu2 %v501_v58  ;;  %1306 = vmatpush.msra.mxu0 %v640_v59  ;;  %v732_v58 = vld [vmem:[%s3353_s5 + $0xab0] sm:$0xff]  ;;  %v634_v59 = vld [vmem:[%s3353_s5 + $0x7a0] sm:$0xff] }
 0x1aa   :  { %1329 = vmatpush.msra.mxu1 %v731_v60  ;;  %1358 = vmatpush.msra.mxu3 %v585_v61  ;;  %v871_v60 = vpop.f32.mrf.mxu2  ;;  %v627_v61 = vld [vmem:[%s3353_s5 + $0x768] sm:$0xff] }
 0x1ab   :  { %1330 = vmatmul.f32.vlgmr.msra.gmra.mxu1 %v2368_v48  ;;  %1335 = vmatpush.msra.mxu2 %v494_v62  ;;  %v620_v62 = vld [vmem:[%s3353_s5 + $0x730] sm:$0xff] }
 0x1ac   :  { %1394 = vmatpush.msrb.mxu1 %v837_v63  ;;  %1307 = vmatpush.msra.mxu0 %v633_v0  ;;  %v911_v63 = vpop.f32.mrf.mxu0  ;;  %v931_v0 = vpop.f32.mrf.mxu1 }
 0x1ad   :  { %1336 = vmatpush.msra.mxu2 %v487_v1  ;;  %1359 = vmatpush.msra.mxu3 %v578_v2  ;;  %v838_v2 = vld [vmem:[%s3354_s6] sm:$0x7f] }
 0x1ae   :  { %1395 = vmatpush.msrb.mxu1 %v830_v3  ;;  %1308 = vmatpush.msra.mxu0 %v626_v4  ;;  %v841_v4 = vperm.slane %v838_v2, 1 }
 0x1af   :  { %1337 = vmatpush.msra.mxu2 %v480_v5  ;;  %1360 = vmatpush.msra.mxu3 %v571_v6  ;;  %v842_v5 = vperm.slane %v838_v2, 2 }
 0x1b0   :  { %1396 = vmatpush.msrb.mxu1 %v823_v7  ;;  %1309 = vmatpush.msra.mxu0 %v619_v8 }
 0x1b1   :  { %1310 = vmatmul.f32.vlgmr.msra.gmra.mxu0 %v2396_v57  ;;  %1338 = vmatpush.msra.mxu2 %v473_v9  ;;  %v840_v9 = vperm.slane %v838_v2, 0 }
 0x1b2   :  { %1361 = vmatpush.msra.mxu3 %v564_v10  ;;  %1374 = vmatpush.msrb.mxu0 %v725_v11  ;;  %v951_v1 = vpop.f32.mrf.mxu2 }
 0x1b3   :  { %1397 = vmatpush.msrb.mxu1 %v816_v12  ;;  %1339 = vmatpush.msra.mxu2 %v466_v13  ;;  %v952_v8 = vadd.f32 %v951_v1, %v841_v4 }
 0x1b4   :  { %1362 = vmatpush.msra.mxu3 %v557_v14  ;;  %1375 = vmatpush.msrb.mxu0 %v718_v15  ;;  %v1011_v6 = vpop.f32.mrf.mxu1  ;;  %v872_v14 = vadd.f32 %v871_v60, %v840_v9  ;;  %v843_v15 = vperm.slane %v838_v2, 3 }
 0x1b5   :  { %1398 = vmatpush.msrb.mxu1 %v809_v16  ;;  %1340 = vmatpush.msra.mxu2 %v459_v17 }
 0x1b6   :  { %1363 = vmatpush.msra.mxu3 %v550_v18  ;;  %1376 = vmatpush.msrb.mxu0 %v711_v19 }
 0x1b7   :  { %1399 = vmatpush.msrb.mxu1 %v802_v20  ;;  %1341 = vmatpush.msra.mxu2 %v452_v21 }
 0x1b8   :  { %1364 = vmatpush.msra.mxu3 %v543_v22  ;;  %1377 = vmatpush.msrb.mxu0 %v704_v23 }
 0x1b9   :  { %1400 = vmatpush.msrb.mxu1 %v795_v24  ;;  %1342 = vmatpush.msra.mxu2 %v445_v25 }
 0x1ba   :  { %1365 = vmatpush.msra.mxu3 %v536_v26  ;;  %1378 = vmatpush.msrb.mxu0 %v697_v27 }
 0x1bb   :  { %1401 = vmatpush.msrb.mxu1 %v788_v28  ;;  %1343 = vmatpush.msra.mxu2 %v438_v29 }
 0x1bc   :  { %1366 = vmatpush.msra.mxu3 %v529_v30  ;;  %1379 = vmatpush.msrb.mxu0 %v690_v31 }
 0x1bd   :  { %1402 = vmatpush.msrb.mxu1 %v781_v32  ;;  %1344 = vmatpush.msra.mxu2 %v431_v33 }
 0x1be   :  { %1367 = vmatpush.msra.mxu3 %v522_v35  ;;  %1380 = vmatpush.msrb.mxu0 %v683_v36 }
 0x1bf   :  { %1403 = vmatpush.msrb.mxu1 %v774_v37  ;;  %1345 = vmatpush.msra.mxu2 %v424_v38 }
 0x1c0   :  { %1368 = vmatpush.msra.mxu3 %v515_v39  ;;  %1381 = vmatpush.msrb.mxu0 %v676_v40 }
 0x1c1   :  { %1404 = vmatpush.msrb.mxu1 %v767_v41  ;;  %1346 = vmatpush.msra.mxu2 %v417_v42  ;;  %v845_v41 = vperm.slane %v838_v2, 5 }
 0x1c2   :  { %1369 = vmatpush.msra.mxu3 %v508_v43  ;;  %1382 = vmatpush.msrb.mxu0 %v669_v45  ;;  %v1091_v16 = vpop.f32.mrf.mxu1 }
 0x1c3   :  { %1405 = vmatpush.msrb.mxu1 %v760_v46  ;;  %1370 = vmatmul.f32.vlgmr.msra.gmra.mxu3 %v2344_v34  ;;  %v648_v34 = vld [vmem:[%s3353_s5 + $0x810] sm:$0xff]  ;;  %s1499_s5 = smov [#allocation2]  }
 0x1c4   :  { %1347 = vmatpush.msra.mxu2 %v410_v47  ;;  %1383 = vmatpush.msrb.mxu0 %v662_v49  ;;  %v844_v47 = vperm.slane %v838_v2, 4  ;;  %s1447_s6 = sshll.u32 %s1499_s5, 4  ;;  %s1448_s6 = int_to_ptr.vmem [resolvable:$true] %s1447_s6 }
 0x1c5   :  { %1406 = vmatpush.msrb.mxu1 %v753_v50  ;;  %v1031_v7 = vpop.f32.mrf.mxu2 }
 0x1c6   :  { %1348 = vmatpush.msra.mxu2 %v403_v51  ;;  %1384 = vmatpush.msrb.mxu0 %v655_v52  ;;  %v1032_v10 = vadd.f32 %v1031_v7, %v842_v5 }
 0x1c7   :  { %1407 = vmatpush.msrb.mxu1 %v746_v53  ;;  %v846_v53 = vperm.slane %v838_v2, 6 }
 0x1c8   :  { %1349 = vmatpush.msra.mxu2 %v396_v54  ;;  %1385 = vmatpush.msrb.mxu0 %v648_v34 }
 0x1c9   :  { %1408 = vmatpush.msrb.mxu1 %v739_v55  ;;  %1350 = vmatmul.f32.vlgmr.msra.gmra.mxu2 %v2359_v44  ;;  %v891_v44 = vpop.f32.mrf.mxu3 }
 0x1ca   :  { %1386 = vmatpush.msrb.mxu0 %v641_v56  ;;  %v892_v19 = vadd.f32 %v891_v44, %v872_v14 }
 0x1cb   :  { %1409 = vmatpush.msrb.mxu1 %v732_v58 }
 0x1cc   :  { %1410 = vmatmul.f32.vlgmr.msrb.gmra.mxu1 %v2368_v48  ;;  %1387 = vmatpush.msrb.mxu0 %v634_v59  ;;  %v991_v48 = vpop.f32.mrf.mxu0  ;;  %v912_v26 = vadd.f32 %v911_v63, %v892_v19 }
 0x1ce   :  { %1388 = vmatpush.msrb.mxu0 %v627_v61  ;;  %v932_v32 = vadd.f32 %v931_v0, %v912_v26 }
 0x1d0   :  { %1389 = vmatpush.msrb.mxu0 %v620_v62 }
 0x1d1   :  { %1390 = vmatmul.f32.vlgmr.msrb.gmra.mxu0 %v2396_v57  ;;  %v971_v3 = vpop.f32.mrf.mxu3 }
 0x1d2   :  { %v972_v12 = vadd.f32 %v971_v3, %v952_v8 }
 0x1d4   :  { %v1071_v13 = vpop.f32.mrf.mxu0  ;;  %v992_v17 = vadd.f32 %v991_v48, %v972_v12 }
 0x1d6   :  { %v1012_v23 = vadd.f32 %v1011_v6, %v992_v17 }
 0x1d8   :  { %v1421_v30 = vrot.slane %v1012_v23, 6 }
 0x1d9   :  { %v1051_v11 = vpop.f32.mrf.mxu3 }
 0x1da   :  { %v1052_v57 = vadd.f32 %v1051_v11, %v1032_v10  ;;  %v1427_v36 = vsel %vm1426_vm1, %v932_v32, %v1421_v30 }
 0x1dc   :  { %v1072_v20 = vadd.f32 %v1071_v13, %v1052_v57 }
 0x1de   :  { %v1092_v27 = vadd.f32 %v1091_v16, %v1072_v20 }
 0x1e0   :  { %v1422_v33 = vrot.slane %v1092_v27, 4 }
 0x1e1   :  { %v1131_v22 = vpop.f32.mrf.mxu3 }
 0x1e4   :  { %v1171_v29 = vpop.f32.mrf.mxu1 }
 0x1e7   :  { %v1111_v18 = vpop.f32.mrf.mxu2 }
 0x1e8   :  { %v1112_v21 = vadd.f32 %v1111_v18, %v843_v15 }
 0x1ea   :  { %v1132_v24 = vadd.f32 %v1131_v22, %v1112_v21  ;;  %v1151_v25 = vpop.f32.mrf.mxu0 }
 0x1ec   :  { %v1152_v28 = vadd.f32 %v1151_v25, %v1132_v24 }
 0x1ee   :  { %v1172_v31 = vadd.f32 %v1171_v29, %v1152_v28 }
 0x1f0   :  { %v1423_v35 = vrot.slane %v1172_v31, 2 }
 0x1f2   :  { %v1429_v37 = vsel %vm1428_vm2, %v1422_v33, %v1423_v35 }
 0x1f3   :  { %v1431_v38 = vsel %vm1430_vm3, %v1427_v36, %v1429_v37 }
 0x1f4   :  { %1436 = vst [vmem:[#allocation2] sm:$0xff] %v1431_v38 }
 0x202   :  { %v1211_v40 = vpop.f32.mrf.mxu3 }
 0x206   :  { %v1251_v45 = vpop.f32.mrf.mxu1 }
 0x209   :  { %v1191_v39 = vpop.f32.mrf.mxu2 }
 0x20a   :  { %v1192_v51 = vadd.f32 %v1191_v39, %v844_v47 }
 0x20c   :  { %v1231_v43 = vpop.f32.mrf.mxu0  ;;  %v1212_v55 = vadd.f32 %v1211_v40, %v1192_v51 }
 0x20e   :  { %v1232_v62 = vadd.f32 %v1231_v43, %v1212_v55 }
 0x210   :  { %v1252_v2 = vadd.f32 %v1251_v45, %v1232_v62 }
 0x224   :  { %v1291_v49 = vpop.f32.mrf.mxu3 }
 0x228   :  { %v1331_v54 = vpop.f32.mrf.mxu1 }
 0x22b   :  { %v1271_v42 = vpop.f32.mrf.mxu2 }
 0x22c   :  { %v1272_v46 = vadd.f32 %v1271_v42, %v845_v41 }
 0x22e   :  { %v1292_v50 = vadd.f32 %v1291_v49, %v1272_v46  ;;  %v1311_v52 = vpop.f32.mrf.mxu0 }
 0x230   :  { %v1312_v34 = vadd.f32 %v1311_v52, %v1292_v50 }
 0x232   :  { %v1332_v59 = vadd.f32 %v1331_v54, %v1312_v34 }
 0x234   :  { %v1424_v0 = vrot.slane %v1332_v59, 6 }
 0x236   :  { %v1432_v48 = vsel %vm1426_vm1, %v1252_v2, %v1424_v0 }
 0x246   :  { %v1371_v60 = vpop.f32.mrf.mxu3 }
 0x249   :  { %v1411_v1 = vpop.f32.mrf.mxu1 }
 0x24c   :  { %v1351_v56 = vpop.f32.mrf.mxu2 }
 0x24d   :  { %v1352_v58 = vadd.f32 %v1351_v56, %v846_v53 }
 0x24e   :  { %v1391_v44 = vpop.f32.mrf.mxu0 }
 0x24f   :  { %v1372_v61 = vadd.f32 %v1371_v60, %v1352_v58 }
 0x251   :  { %v1392_v63 = vadd.f32 %v1391_v44, %v1372_v61 }
 0x253   :  { %v1412_v3 = vadd.f32 %v1411_v1, %v1392_v63 }
 0x255   :  { %v1425_v4 = vrot.slane %v1412_v3, 4 }
 0x257   :  { %v1433_v5 = vsel %vm1430_vm3, %v1432_v48, %v1425_v4 }
 0x258   :  { %1441 = vst.msk [vmem:[#allocation2 + $0x8] sm:$0x3f] %vm1440_vm7, %v1433_v5 }
 0x259   :  { %1452 = dma.vmem_to_hbm [thread:$0]  %s1448_s6, 224, %s1450_s4, [#allocation3]  }
 0x25a   :  { %1497 = dma.done.wait [#allocation3], 224  }
 0x25b   :  { %1498 = vsyncadd [#allocation3], 4294967072 }
 0x25c   :  { %1457 = vsyncpa [#allocation3], 1 }

</bundles_post_ra>
